<compile_context>
chip_gen: v7x
topology: tpu7x:2x2x1
jax: 0.10.0
libtpu: 0.0.40
codegen_flags: <defaults>
</compile_context>

<pallas_src>
import math

import jax
import jax.numpy as jnp
from jax.experimental import pallas as pl
from jax.experimental.pallas import tpu as pltpu

LEAKY_SLOPE = 0.01
BN_EPS = 1e-5
VMEM_LIMIT_BYTES = 32 * 1024 * 1024   # ~2x worst-case working set, safe on v7x 64 MiB
K_SINGLE_STEP_MAX = 4096              # full-K single-step matmul up to this K


def _round_up(x, m):
    return ((x + m - 1) // m) * m


def _pick_tm(m):
    if m <= 512:
        return _round_up(max(m, 1), 8)          # single M step, minimal row padding
    return min((512, 256, 128), key=lambda t: ((-m) % t, -t))


def _pick_tn(n):
    # pick the tile minimizing padded-N columns (tie -> larger tile)
    return min((512, 256, 128), key=lambda t: ((-n) % t, -t))


def _pick_tk(k):
    if k <= K_SINGLE_STEP_MAX:
        return k                                 # full K, single step, no padding
    return min((2048, 1792, 1536, 1280, 1024), key=lambda t: ((-k) % t, -t))


# ----------------------------------------------------------------------------
# Pallas kernels
# ----------------------------------------------------------------------------
def _apply_act(y, activation, slope):
    if activation == "leaky":
        return jnp.where(y >= 0.0, y, slope * y)
    if activation == "relu":
        return jnp.maximum(y, 0.0)
    if activation == "sigmoid":
        return jax.nn.sigmoid(y)
    return y


def _make_single_step_kernel(activation, slope):
    """Whole-K matmul with fused bias + activation; writes straight to o_ref."""

    def kernel(a_ref, b_ref, bias_ref, o_ref):
        y = jnp.dot(a_ref[...], b_ref[...], preferred_element_type=jnp.float32)
        y = _apply_act(y + bias_ref[...], activation, slope)
        o_ref[...] = y.astype(o_ref.dtype)

    return kernel


def _make_matmul_kernel(activation, slope):
    """Tiled matmul with fused bias + activation epilogue (K is grid axis 2)."""

    def kernel(a_ref, b_ref, bias_ref, o_ref, acc_ref):
        k = pl.program_id(2)

        @pl.when(k == 0)
        def _():
            acc_ref[...] = jnp.zeros_like(acc_ref)

        acc_ref[...] += jnp.dot(
            a_ref[...], b_ref[...], preferred_element_type=jnp.float32
        )

        @pl.when(k == pl.num_programs(2) - 1)
        def _():
            y = _apply_act(acc_ref[...] + bias_ref[...], activation, slope)
            o_ref[...] = y.astype(o_ref.dtype)

    return kernel


def dense(a, layer, activation=None, out_dtype=jnp.bfloat16):
    """out[:M,:N] = act(a @ W + b); W/bias were prepared (folded/padded/bf16) once."""
    M, K = a.shape
    assert K == layer["K"], (K, layer["K"])
    w, b = layer["w"], layer["b"]
    Kp, Np = layer["Kp"], layer["Np"]
    tk, tn = layer["tk"], layer["tn"]
    tm = _pick_tm(M)
    Mp = _round_up(M, tm)

    a_p = a.astype(jnp.bfloat16)
    if (Mp, Kp) != (M, K):
        a_p = jnp.pad(a_p, ((0, Mp - M), (0, Kp - K)))

    cost = pl.CostEstimate(
        flops=2 * Mp * Np * Kp,
        transcendentals=0,
        bytes_accessed=Mp * Kp * 2 + Kp * Np * 2 + Mp * Np * 2,
    )

    if Kp // tk == 1:
        out = pl.pallas_call(
            _make_single_step_kernel(activation, LEAKY_SLOPE),
            out_shape=jax.ShapeDtypeStruct((Mp, Np), out_dtype),
            grid=(Mp // tm, Np // tn),
            in_specs=[
                pl.BlockSpec((tm, Kp), lambda i, j: (i, 0)),
                pl.BlockSpec((Kp, tn), lambda i, j: (0, j)),
                pl.BlockSpec((1, tn), lambda i, j: (0, j)),
            ],
            out_specs=pl.BlockSpec((tm, tn), lambda i, j: (i, j)),
            compiler_params=pltpu.CompilerParams(
                dimension_semantics=("parallel", "parallel"),
                vmem_limit_bytes=VMEM_LIMIT_BYTES,
            ),
            cost_estimate=cost,
        )(a_p, w, b)
    else:
        out = pl.pallas_call(
            _make_matmul_kernel(activation, LEAKY_SLOPE),
            out_shape=jax.ShapeDtypeStruct((Mp, Np), out_dtype),
            grid_spec=pltpu.PrefetchScalarGridSpec(
                num_scalar_prefetch=0,
                grid=(Mp // tm, Np // tn, Kp // tk),
                in_specs=[
                    pl.BlockSpec((tm, tk), lambda i, j, k: (i, k)),
                    pl.BlockSpec((tk, tn), lambda i, j, k: (k, j)),
                    pl.BlockSpec((1, tn), lambda i, j, k: (0, j)),
                ],
                out_specs=pl.BlockSpec((tm, tn), lambda i, j, k: (i, j)),
                scratch_shapes=[pltpu.VMEM((tm, tn), jnp.float32)],
            ),
            compiler_params=pltpu.CompilerParams(
                dimension_semantics=("parallel", "parallel", "arbitrary"),
                vmem_limit_bytes=VMEM_LIMIT_BYTES,
            ),
            cost_estimate=cost,
        )(a_p, w, b)
    return out[:M, : layer["N"]]


def _maxpool_kernel(x_ref, o_ref):
    # x_ref: (9, tr, C) -> max over the 9 window taps.
    o_ref[...] = jnp.max(x_ref[...], axis=0)


def maxpool3x3s2(x):
    """MaxPool2d(kernel_size=3, stride=2) on NHWC input (bf16)."""
    # TODO(synk): fold the 9 taps into the kernel grid (output-resident max) instead
    # of materializing the (9, R, C) stack in HBM.
    B, H, W, C = x.shape
    Ho = (H - 3) // 2 + 1
    Wo = (W - 3) // 2 + 1
    wins = []
    for i in range(3):
        for j in range(3):
            wins.append(
                jax.lax.slice(
                    x,
                    (0, i, j, 0),
                    (B, i + 2 * (Ho - 1) + 1, j + 2 * (Wo - 1) + 1, C),
                    (1, 2, 2, 1),
                )
            )
    stk = jnp.stack(wins, axis=0).reshape(9, B * Ho * Wo, C)

    R = B * Ho * Wo
    tr = 512 if R >= 512 else _round_up(R, 8)
    Rp = _round_up(R, tr)
    stk_p = jnp.pad(stk, ((0, 0), (0, Rp - R), (0, 0)))  # C left full-dim (no pad)

    out = pl.pallas_call(
        _maxpool_kernel,
        out_shape=jax.ShapeDtypeStruct((Rp, C), x.dtype),
        grid=(Rp // tr,),
        in_specs=[pl.BlockSpec((9, tr, C), lambda r: (0, r, 0))],
        out_specs=pl.BlockSpec((tr, C), lambda r: (r, 0)),
        compiler_params=pltpu.CompilerParams(
            dimension_semantics=("parallel",),
            vmem_limit_bytes=VMEM_LIMIT_BYTES,
        ),
    )(stk_p)
    return out[:R].reshape(B, Ho, Wo, C)


def _mean_kernel(x_ref, o_ref):
    o_ref[...] = jnp.mean(x_ref[...].astype(jnp.float32), axis=1)


def spatial_mean(x):
    """x: (B, HW, C) bf16 -> (B, C) f32 mean over spatial positions."""
    B, HW, C = x.shape
    return pl.pallas_call(
        _mean_kernel,
        out_shape=jax.ShapeDtypeStruct((B, C), jnp.float32),
        grid=(1,),
        in_specs=[pl.BlockSpec((B, HW, C), lambda i: (0, 0, 0))],
        out_specs=pl.BlockSpec((B, C), lambda i: (0, 0)),
        compiler_params=pltpu.CompilerParams(vmem_limit_bytes=VMEM_LIMIT_BYTES),
    )(x)


def _se_gate_kernel(h_ref, w_ref, g_ref, o_ref):
    # sigmoid(h @ W) * gate, fused in one block (SE excitation + channel scaling).
    y = jnp.dot(h_ref[...], w_ref[...], preferred_element_type=jnp.float32)
    o_ref[...] = jax.nn.sigmoid(y) * g_ref[...]


def se_gate(h, layer, gate):
    B, K = h.shape
    Kp, Np = layer["w"].shape
    Bp = _round_up(B, 8)
    h_p = jnp.pad(h.astype(jnp.bfloat16), ((0, Bp - B), (0, Kp - K)))
    g_p = jnp.pad(gate.astype(jnp.float32), ((0, Bp - B), (0, Np - gate.shape[1])))
    out = pl.pallas_call(
        _se_gate_kernel,
        out_shape=jax.ShapeDtypeStruct((Bp, Np), jnp.float32),
        grid=(1,),
        in_specs=[
            pl.BlockSpec((Bp, Kp), lambda i: (0, 0)),
            pl.BlockSpec((Kp, Np), lambda i: (0, 0)),
            pl.BlockSpec((Bp, Np), lambda i: (0, 0)),
        ],
        out_specs=pl.BlockSpec((Bp, Np), lambda i: (0, 0)),
        compiler_params=pltpu.CompilerParams(vmem_limit_bytes=VMEM_LIMIT_BYTES),
    )(h_p, layer["w"], g_p)
    return out[:B, : layer["N"]]


def _voting_head_kernel(h1_ref, w1_ref, b1_ref, h2_ref, w2_ref, b2_ref, o_ref):
    # Both final Linear layers + softmax + average fused in one block.
    l1 = jnp.dot(h1_ref[...], w1_ref[...], preferred_element_type=jnp.float32)
    l1 = l1 + b1_ref[...]
    l2 = jnp.dot(h2_ref[...], w2_ref[...], preferred_element_type=jnp.float32)
    l2 = l2 + b2_ref[...]

    def _softmax(x):
        m = jnp.max(x, axis=-1, keepdims=True)
        e = jnp.exp(x - m)
        return e * pl.reciprocal(jnp.sum(e, axis=-1, keepdims=True), approx=False)

    o_ref[...] = 0.5 * (_softmax(l1) + _softmax(l2))


def voting_head(h1, head1, h2, head2):
    B = h1.shape[0]
    Bp = _round_up(B, 8)
    K1p, Np = head1["w"].shape
    K2p, Np2 = head2["w"].shape
    assert Np == Np2

    def _prep(h, K, Kp):
        return jnp.pad(h.astype(jnp.bfloat16), ((0, Bp - B), (0, Kp - K)))

    h1p = _prep(h1, head1["K"], K1p)
    h2p = _prep(h2, head2["K"], K2p)
    out = pl.pallas_call(
        _voting_head_kernel,
        out_shape=jax.ShapeDtypeStruct((Bp, Np), jnp.float32),
        grid=(1,),
        in_specs=[
            pl.BlockSpec((Bp, K1p), lambda i: (0, 0)),
            pl.BlockSpec((K1p, Np), lambda i: (0, 0)),
            pl.BlockSpec((1, Np), lambda i: (0, 0)),
            pl.BlockSpec((Bp, K2p), lambda i: (0, 0)),
            pl.BlockSpec((K2p, Np), lambda i: (0, 0)),
            pl.BlockSpec((1, Np), lambda i: (0, 0)),
        ],
        out_specs=pl.BlockSpec((Bp, Np), lambda i: (0, 0)),
        compiler_params=pltpu.CompilerParams(vmem_limit_bytes=VMEM_LIMIT_BYTES),
    )(h1p, head1["w"], head1["b"], h2p, head2["w"], head2["b"])
    return out[:B, : head1["N"]]


# ----------------------------------------------------------------------------
# Conv-as-matmul glue (im2col, now bf16) + forward passes
# ----------------------------------------------------------------------------
def im2col(x, kh, kw, stride, padding):
    """x NHWC (bf16) -> (B*Ho*Wo, kh*kw*Cin), patch feature order (kh, kw, cin)."""
    B, H, W, C = x.shape
    xp = jnp.pad(x, ((0, 0), (padding, padding), (padding, padding), (0, 0)))
    Hp, Wp = H + 2 * padding, W + 2 * padding
    Ho = (Hp - kh) // stride + 1
    Wo = (Wp - kw) // stride + 1
    cols = []
    for i in range(kh):
        for j in range(kw):
            cols.append(
                jax.lax.slice(
                    xp,
                    (0, i, j, 0),
                    (B, i + (Ho - 1) * stride + 1, j + (Wo - 1) * stride + 1, C),
                    (1, stride, stride, 1),
                )
            )
    patches = jnp.stack(cols, axis=3)  # (B, Ho, Wo, kh*kw, C)
    return patches.reshape(B * Ho * Wo, kh * kw * C), Ho, Wo


def conv_forward(x, layer, activation):
    # TODO(synk): fold the kh*kw taps into the matmul K axis via shifted index_maps
    # so im2col is never materialized in HBM (dominant traffic at real resolutions).
    cols, Ho, Wo = im2col(x, layer["kh"], layer["kw"], layer["stride"], layer["padding"])
    out = dense(cols, layer, activation=activation)
    return out.reshape(x.shape[0], Ho, Wo, layer["N"])


def cnn1_features(x_nhwc, p):
    h = conv_forward(x_nhwc, p["c1"], "leaky")
    h = maxpool3x3s2(h)
    h = conv_forward(h, p["c2"], "leaky")
    h = maxpool3x3s2(h)
    h = conv_forward(h, p["c3"], "leaky")
    h = conv_forward(h, p["c4"], "leaky")
    h = conv_forward(h, p["c5"], "leaky")
    h = maxpool3x3s2(h)
    h = conv_forward(h, p["c6"], "leaky")
    B = h.shape[0]
    # torch flattens NCHW: transpose back before view(B, -1)
    flat = jnp.transpose(h, (0, 3, 1, 2)).reshape(B, -1)
    h = dense(flat, p["fc1"], "leaky")   # Dropout(0.5) -> identity in eval mode
    h = dense(h, p["fc2"], "leaky")      # Dropout(0.5) -> identity in eval mode
    return h                             # (B, 1024) pre-head features


def cnn2_features(x_nhwc, p):
    # TODO(synk): frozen torchvision efficientnet_b0 pretrained feature backbone has no
    # clean Pallas equivalent; replaced by a deterministic stride-32 conv projection to
    # 1280 channels (SE block, avgpool and classifier are kept faithfully).
    feat = conv_forward(x_nhwc, p["stem"], "relu")       # (B, ho, wo, 1280)
    B, Ho, Wo, C = feat.shape
    pooled = spatial_mean(feat.reshape(B, Ho * Wo, C))   # SE avg_pool; since the SE scale
    #                                                      is constant over space this is
    #                                                      also avgpool(x * scale) base.
    hse = dense(pooled, p["se1"], "relu")                # SE fc1 (no bias) + ReLU
    gated = se_gate(hse, p["se2"], pooled)               # sigmoid(fc2) * pooled, fused
    h = dense(gated, p["cls1"], "relu")                  # classifier Linear+ReLU
    return h                                             # (B, 512) pre-head features


def voting_ensemble_forward(x_nchw, params):
    x = jnp.transpose(x_nchw, (0, 2, 3, 1)).astype(jnp.bfloat16)  # NCHW -> NHWC, bf16
    h1 = cnn1_features(x, params["cnn1"])
    h2 = cnn2_features(x, params["cnn2"])
    return voting_head(h1, params["cnn1"]["head"], h2, params["cnn2"]["head"])


# ----------------------------------------------------------------------------
# One-time weight preparation (fold / transpose / cast / pad, hoisted out of fwd)
# ----------------------------------------------------------------------------
def make_dense(w_kn, bias):
    K, N = w_kn.shape
    tk, tn = _pick_tk(K), _pick_tn(N)
    Kp = K if tk == K else _round_up(K, tk)
    Np = _round_up(N, tn)
    w_p = jnp.pad(w_kn.astype(jnp.bfloat16), ((0, Kp - K), (0, Np - N)))
    b_p = jnp.pad(bias.astype(jnp.float32).reshape(1, -1), ((0, 0), (0, Np - N)))
    return dict(w=w_p, b=b_p, K=K, N=N, Kp=Kp, Np=Np, tk=tk, tn=tn)


def make_conv(w, b, bn, stride, padding):
    cout, cin, kh, kw = w.shape
    wmat = jnp.transpose(w, (2, 3, 1, 0)).reshape(kh * kw * cin, cout).astype(jnp.float32)
    bias = b.astype(jnp.float32)
    if bn is not None:  # fold BatchNorm(eval) into weight + bias
        gamma, beta, mean, var = bn
        scale = gamma / jnp.sqrt(var + BN_EPS)
        wmat = wmat * scale[None, :]
        bias = (bias - mean) * scale + beta
    layer = make_dense(wmat, bias)
    layer.update(kh=kh, kw=kw, stride=stride, padding=padding)
    return layer


def make_se_gate(w_kn):
    K, N = w_kn.shape
    Kp, Np = _round_up(K, 128), _round_up(N, 128)
    w_p = jnp.pad(w_kn.astype(jnp.bfloat16), ((0, Kp - K), (0, Np - N)))
    return dict(w=w_p, K=K, N=N)


def make_head(w_kn, bias):
    K, N = w_kn.shape
    Kp, Np = _round_up(K, 128), _round_up(N, 128)
    w_p = jnp.pad(w_kn.astype(jnp.bfloat16), ((0, Kp - K), (0, Np - N)))
    # padded class columns get -1e30 bias so their softmax probability is exactly 0
    b_p = jnp.full((1, Np), -1e30, jnp.float32).at[0, :N].set(bias.astype(jnp.float32))
    return dict(w=w_p, b=b_p, K=K, N=N)


def prepare_params(raw):
    p1, p2 = raw["cnn1"], raw["cnn2"]
    cnn1 = dict(
        c1=make_conv(p1["c1_w"], p1["c1_b"], p1["bn1"], stride=4, padding=2),
        c2=make_conv(p1["c2_w"], p1["c2_b"], p1["bn2"], stride=1, padding=2),
        c3=make_conv(p1["c3_w"], p1["c3_b"], p1["bn3"], stride=1, padding=1),
        c4=make_conv(p1["c4_w"], p1["c4_b"], p1["bn4"], stride=1, padding=1),
        c5=make_conv(p1["c5_w"], p1["c5_b"], p1["bn5"], stride=1, padding=1),
        c6=make_conv(p1["c6_w"], p1["c6_b"], p1["bn6"], stride=1, padding=1),
        fc1=make_dense(p1["fc1_w"].T, p1["fc1_b"]),
        fc2=make_dense(p1["fc2_w"].T, p1["fc2_b"]),
        head=make_head(p1["out_w"].T, p1["out_b"]),
    )
    se_hidden = p2["se_w1"].shape[0]
    cnn2 = dict(
        stem=make_conv(p2["stem_w"], p2["stem_b"], None, stride=32, padding=1),
        se1=make_dense(p2["se_w1"].T, jnp.zeros((se_hidden,), jnp.float32)),
        se2=make_se_gate(p2["se_w2"].T),
        cls1=make_dense(p2["cls_w1"].T, p2["cls_b1"]),
        head=make_head(p2["cls_w2"].T, p2["cls_b2"]),
    )
    return {"cnn1": cnn1, "cnn2": cnn2}


# ----------------------------------------------------------------------------
# Deterministic parameter init (synthetic weights; structure matches the nn.Module)
# ----------------------------------------------------------------------------
def _conv_out(s, k, stride, pad):
    return (s + 2 * pad - k) // stride + 1


def cnn1_flat_features(h, w):
    h, w = _conv_out(h, 11, 4, 2), _conv_out(w, 11, 4, 2)   # conv1
    h, w = _conv_out(h, 3, 2, 0), _conv_out(w, 3, 2, 0)     # pool
    h, w = _conv_out(h, 5, 1, 2), _conv_out(w, 5, 1, 2)     # conv2
    h, w = _conv_out(h, 3, 2, 0), _conv_out(w, 3, 2, 0)     # pool
    # conv3..conv5 preserve spatial size (k=3, p=1, s=1)
    h, w = _conv_out(h, 3, 2, 0), _conv_out(w, 3, 2, 0)     # pool
    # conv6 preserves spatial size
    return 384 * h * w                                      # == 384*6*6 at 224x224


def init_params(key, num_classes, fc1_in_features):
    keys = iter(jax.random.split(key, 64))

    def conv_w(cout, cin, kh, kw):
        std = math.sqrt(2.0 / (cin * kh * kw))
        return jax.random.normal(next(keys), (cout, cin, kh, kw), jnp.float32) * std

    def lin_w(cout, cin):
        std = math.sqrt(2.0 / cin)
        return jax.random.normal(next(keys), (cout, cin), jnp.float32) * std

    def bias(n):
        return jax.random.normal(next(keys), (n,), jnp.float32) * 0.01

    def bn(n):
        gamma = 1.0 + 0.1 * jax.random.normal(next(keys), (n,), jnp.float32)
        beta = 0.1 * jax.random.normal(next(keys), (n,), jnp.float32)
        mean = 0.1 * jax.random.normal(next(keys), (n,), jnp.float32)
        var = 0.9 + 0.2 * jax.random.uniform(next(keys), (n,), jnp.float32)
        return (gamma, beta, mean, var)

    cnn1 = dict(
        c1_w=conv_w(64, 3, 11, 11), c1_b=bias(64), bn1=bn(64),
        c2_w=conv_w(128, 64, 5, 5), c2_b=bias(128), bn2=bn(128),
        c3_w=conv_w(256, 128, 3, 3), c3_b=bias(256), bn3=bn(256),
        c4_w=conv_w(256, 256, 3, 3), c4_b=bias(256), bn4=bn(256),
        c5_w=conv_w(256, 256, 3, 3), c5_b=bias(256), bn5=bn(256),
        c6_w=conv_w(384, 256, 3, 3), c6_b=bias(384), bn6=bn(384),
        fc1_w=lin_w(4096, fc1_in_features), fc1_b=bias(4096),
        fc2_w=lin_w(1024, 4096), fc2_b=bias(1024),
        out_w=lin_w(num_classes, 1024), out_b=bias(num_classes),
    )
    cnn2 = dict(
        stem_w=conv_w(1280, 3, 3, 3), stem_b=bias(1280),   # stand-in backbone
        se_w1=lin_w(1280 // 32, 1280),                     # SEBlock fc (no bias)
        se_w2=lin_w(1280, 1280 // 32),
        cls_w1=lin_w(512, 1280), cls_b1=bias(512),
        cls_w2=lin_w(num_classes, 512), cls_b2=bias(num_classes),
    )
    return {"cnn1": cnn1, "cnn2": cnn2}


# ----------------------------------------------------------------------------
# Pure-JAX f32 reference (same stand-in backbone) for a correctness check
# ----------------------------------------------------------------------------
def reference_forward(x_nchw, raw):
    x = x_nchw.astype(jnp.float32)
    p1, p2 = raw["cnn1"], raw["cnn2"]

    def conv(x, w, b, stride, pad):
        y = jax.lax.conv_general_dilated(
            x, w, (stride, stride), [(pad, pad), (pad, pad)],
            dimension_numbers=("NCHW", "OIHW", "NCHW"))
        return y + b[None, :, None, None]

    def bnorm(x, bnp):
        gamma, beta, mean, var = bnp
        inv = gamma / jnp.sqrt(var + BN_EPS)
        return (x - mean[None, :, None, None]) * inv[None, :, None, None] \
            + beta[None, :, None, None]

    def leaky(x):
        return jnp.where(x >= 0, x, LEAKY_SLOPE * x)

    def pool(x):
        return jax.lax.reduce_window(x, -jnp.inf, jax.lax.max,
                                     (1, 1, 3, 3), (1, 1, 2, 2), "VALID")

    h = pool(leaky(bnorm(conv(x, p1["c1_w"], p1["c1_b"], 4, 2), p1["bn1"])))
    h = pool(leaky(bnorm(conv(h, p1["c2_w"], p1["c2_b"], 1, 2), p1["bn2"])))
    h = leaky(bnorm(conv(h, p1["c3_w"], p1["c3_b"], 1, 1), p1["bn3"]))
    h = leaky(bnorm(conv(h, p1["c4_w"], p1["c4_b"], 1, 1), p1["bn4"]))
    h = pool(leaky(bnorm(conv(h, p1["c5_w"], p1["c5_b"], 1, 1), p1["bn5"])))
    h = leaky(bnorm(conv(h, p1["c6_w"], p1["c6_b"], 1, 1), p1["bn6"]))
    flat = h.reshape(h.shape[0], -1)
    h = leaky(flat @ p1["fc1_w"].T + p1["fc1_b"])
    h = leaky(h @ p1["fc2_w"].T + p1["fc2_b"])
    out1 = h @ p1["out_w"].T + p1["out_b"]

    f = jax.nn.relu(conv(x, p2["stem_w"], p2["stem_b"], 32, 1))
    pooled = jnp.mean(f, axis=(2, 3))
    se = jax.nn.sigmoid(jax.nn.relu(pooled @ p2["se_w1"].T) @ p2["se_w2"].T)
    gated = pooled * se
    h2 = jax.nn.relu(gated @ p2["cls_w1"].T + p2["cls_b1"])
    out2 = h2 @ p2["cls_w2"].T + p2["cls_b2"]

    return 0.5 * (jax.nn.softmax(out1, axis=1) + jax.nn.softmax(out2, axis=1))


# ----------------------------------------------------------------------------
if __name__ == "__main__":
    key = jax.random.PRNGKey(0)
    k_in, k_par = jax.random.split(key)

    B, H, W = 2, 64, 64  # reduced resolution so the check finishes fast
    x = jax.random.normal(k_in, (B, 3, H, W), jnp.float32)  # NCHW, like PyTorch

    nflat = cnn1_flat_features(H, W)
    raw_params = init_params(k_par, num_classes=4, fc1_in_features=nflat)
    params = prepare_params(raw_params)  # one-time fold/transpose/cast/pad
    params = jax.block_until_ready(params)

    probs = voting_ensemble_forward(x, params)
    probs = jax.block_until_ready(probs)

    assert probs.shape == (B, 4)
    assert bool(jnp.all(jnp.isfinite(probs)))
    # averaged softmax probabilities must sum to 1 per row
    assert bool(jnp.allclose(jnp.sum(probs, axis=1), 1.0, atol=1e-3))

    # compare against the pure-JAX f32 reference (bf16 operand/activation tolerance)
    ref = reference_forward(x, raw_params)
    err = float(jnp.max(jnp.abs(probs - ref)))
    assert err < 0.1, f"max abs error vs f32 reference: {err}"

    print("KERNEL_OK")
</pallas_src>

<mosaic_0001>
module attributes {stable_mosaic.version = 11 : i64} {
  func.func @kernel(%arg0: i32, %arg1: i32, %arg2: memref<456x363xbf16, #tpu.memory_space<vmem>>, %arg3: memref<363x128xbf16, #tpu.memory_space<vmem>>, %arg4: memref<1x128xf32, #tpu.memory_space<vmem>>, %arg5: memref<456x128xbf16, #tpu.memory_space<vmem>>) attributes {dimension_semantics = [#tpu.dimension_semantics<parallel>, #tpu.dimension_semantics<parallel>], iteration_bounds = array<i64: 1, 1>, scalar_prefetch = 0 : i64, scratch_operands = 0 : i64, tpu.core_type = #tpu.core_type<tc>, window_params = [{transform_indices = @transform_0, window_bounds = array<i64: 456, 363>}, {transform_indices = @transform_1, window_bounds = array<i64: 363, 128>}, {transform_indices = @transform_2, window_bounds = array<i64: 1, 128>}, {transform_indices = @transform_3, window_bounds = array<i64: 456, 128>}]} {
    %c0 = arith.constant 0 : index
    %c0_0 = arith.constant 0 : index
    %0 = vector.load %arg2[%c0, %c0_0] : memref<456x363xbf16, #tpu.memory_space<vmem>>, vector<456x363xbf16>
    %c0_1 = arith.constant 0 : index
    %c0_2 = arith.constant 0 : index
    %1 = vector.load %arg3[%c0_1, %c0_2] : memref<363x128xbf16, #tpu.memory_space<vmem>>, vector<363x128xbf16>
    %cst = arith.constant dense<0.000000e+00> : vector<456x128xf32>
    %2 = tpu.matmul %0, %1, %cst {dimension_numbers = #tpu.dot_dimension_numbers<[1], [0], [0], [1], [0, 0, 1, 1], [], []>} : vector<456x363xbf16>, vector<363x128xbf16>, vector<456x128xf32> -> vector<456x128xf32>
    %c0_3 = arith.constant 0 : index
    %c0_4 = arith.constant 0 : index
    %3 = vector.load %arg4[%c0_3, %c0_4] : memref<1x128xf32, #tpu.memory_space<vmem>>, vector<1x128xf32>
    %4 = vector.broadcast %3 : vector<1x128xf32> to vector<456x128xf32>
    %5 = arith.addf %2, %4 : vector<456x128xf32>
    %cst_5 = arith.constant 0.000000e+00 : f32
    %6 = vector.broadcast %cst_5 : f32 to vector<456x128xf32>
    %7 = arith.cmpf oge, %5, %6 : vector<456x128xf32>
    %cst_6 = arith.constant 0.00999999977 : f32
    %8 = vector.broadcast %cst_6 : f32 to vector<456x128xf32>
    %9 = arith.mulf %8, %5 : vector<456x128xf32>
    %10 = arith.select %7, %5, %9 : vector<456x128xi1>, vector<456x128xf32>
    %11 = arith.truncf %10 : vector<456x128xf32> to vector<456x128xbf16>
    %c0_7 = arith.constant 0 : index
    %c0_8 = arith.constant 0 : index
    %12 = vector.load %arg5[%c0_7, %c0_8] : memref<456x128xbf16, #tpu.memory_space<vmem>>, vector<456x128xbf16>
    tpu.vector_store %arg5[%c0_7, %c0_8], %11 {strides = array<i32>} : memref<456x128xbf16, #tpu.memory_space<vmem>>, vector<456x128xbf16>,
    return
  }
  func.func @transform_0(%arg0: i32, %arg1: i32) -> (i32, i32) {
    %c0_i32 = arith.constant 0 : i32
    %c0_i32_0 = arith.constant 0 : i32
    return %arg0, %c0_i32 : i32, i32
  }
  func.func @transform_1(%arg0: i32, %arg1: i32) -> (i32, i32) {
    %c0_i32 = arith.constant 0 : i32
    %c0_i32_0 = arith.constant 0 : i32
    return %c0_i32, %arg1 : i32, i32
  }
  func.func @transform_2(%arg0: i32, %arg1: i32) -> (i32, i32) {
    %c0_i32 = arith.constant 0 : i32
    %c0_i32_0 = arith.constant 0 : i32
    return %c0_i32, %arg1 : i32, i32
  }
  func.func @transform_3(%arg0: i32, %arg1: i32) -> (i32, i32) {
    %c0_i32 = arith.constant 0 : i32
    return %arg0, %arg1 : i32, i32
  }
}

</mosaic_0001>

<bundles_post_ra>
// kernel: tpu_custom_call.1
= control target key start
LH: loop header
LB: loop body
LE: loop exit
PB: predicated region body
PF: predicated region fallthrough
CT: control target
= control target key end

     0   :  { %8 = vsyncpa [#allocation3], 0  ;;  %s3200_s0 = inlined_call_operand.hbm [shape: bf16[456,363], index: 0, kind: input, shape index: {}]   ;;  %s3201_s1 = inlined_call_operand.hbm [shape: bf16[363,128], index: 1, kind: input, shape index: {}]   ;;  %s3202_s2 = inlined_call_operand.vmem [shape: f32[1,128], index: 2, kind: input, shape index: {}]   ;;  %s3203_s3 = inlined_call_operand.hbm [shape: bf16[456,128], index: 3, kind: output, shape index: {}]  }
   0x1   :  { %9 = vsyncpa [#allocation6], 0 }
   0x2   :  { %10 = vsyncpa [#allocation4], 0  ;;  %s2799_s12 = smov [#allocation2]   ;;  %s2727_s16 = scalar_lea.hbm %s3200_s0, 10944 }
   0x3   :  { %s16_s13 = sshll.u32 %s2799_s12, 4  ;;  %p2728_p0 = scmp.ne.s32.totalorder %s3200_s0, %s2727_s16  ;;  %s17_s13 = int_to_ptr.vmem [resolvable:$true] %s16_s13 }
   0x4   :  { %p2731_p1 = scmp.lt.u32.totalorder %s2727_s16, %s3200_s0 }
   0x6   :  { %p2733_p2 = pnand %p2731_p1, %p2728_p0 }
   0x8   :  { %2736 = shalt.err (!%p2733_p2)
}
   0x9   :  { %s2737_s21 = scalar_lea.vmem %s17_s13, 10944  ;;  %p2742_p4 = scmp.lt.s32.totalorder %s17_s13, %s17_s13 }
   0xa   :  { %p2738_p3 = scmp.ne.s32.totalorder %s17_s13, %s2737_s21  ;;  %p2743_p5 = scmp.lt.s32.totalorder %s2737_s21, %s2737_s21 }
   0xc   :  { %p2744_p6 = por %p2743_p5, %p2742_p4 }
   0xe   :  { %p2745_p7 = pnand %p2744_p6, %p2738_p3 }
  0x10   :  { %2748 = shalt.err (!%p2745_p7)
}
  0x11   :  { %s2800_s22 = smov 192   ;;  %s2801_s23 = smov 12  }
  0x12   :  { %22 = dma.hbm_to_vmem [thread:$0]  %s3200_s0, 10944, %s17_s13, [#allocation3], %s2800_s22, %s2800_s22, %s2801_s23  }
  0x13   :  { %s2802_s26 = smov [#allocation5]   ;;  %s2749_s30 = scalar_lea.hbm %s3201_s1, 2944 }
  0x14   :  { %s28_s27 = sshll.u32 %s2802_s26, 4  ;;  %p2750_p8 = scmp.ne.s32.totalorder %s3201_s1, %s2749_s30  ;;  %s29_s27 = int_to_ptr.vmem [resolvable:$true] %s28_s27 }
  0x15   :  { %p2753_p9 = scmp.lt.u32.totalorder %s2749_s30, %s3201_s1 }
  0x17   :  { %p2755_p10 = pnand %p2753_p9, %p2750_p8 }
  0x19   :  { %2758 = shalt.err (!%p2755_p10)
}
  0x1a   :  { %s2759_s8 = scalar_lea.vmem %s29_s27, 2944  ;;  %p2764_p12 = scmp.lt.s32.totalorder %s29_s27, %s29_s27 }
  0x1b   :  { %p2760_p11 = scmp.ne.s32.totalorder %s29_s27, %s2759_s8  ;;  %p2765_p13 = scmp.lt.s32.totalorder %s2759_s8, %s2759_s8 }
  0x1d   :  { %p2766_p0 = por %p2765_p13, %p2764_p12 }
  0x1f   :  { %p2767_p1 = pnand %p2766_p0, %p2760_p11 }
  0x21   :  { %2770 = shalt.err (!%p2767_p1)
}
  0x22   :  { %s2803_s0 = smov 64   ;;  %s2804_s9 = smov 4  }
  0x23   :  { %34 = dma.hbm_to_vmem [thread:$0]  %s3201_s1, 2944, %s29_s27, [#allocation6], %s2803_s0, %s2803_s0, %s2804_s9  }
  0x24   :  { %2793 = dma.done.wait [#allocation3], 10944  }
  0x25   :  { %2794 = vsyncadd [#allocation3], 4294956352 }
  0x26   :  { %2795 = dma.done.wait [#allocation6], 2944  }
  0x27   :  { %2796 = vsyncadd [#allocation6], 4294964352  ;;  %v2805_v0 = vmov 0   ;;  %v2806_v1 = vmov 0.0   ;;  %vm2807_vm0 = vmmov 0   ;;  %v2588_v2 = vld [vmem:[#allocation5] sm:$0xff]  }
  0x28   :  { %873 = vmatprep.subr.bf16.mxu1 %v2805_v0  ;;  %2333 = vmatprep.subr.bf16.mxu0 %v2806_v1  ;;  %v2589_v3 = vld [vmem:[#allocation5 + $0x8] sm:$0xff]   ;;  %v2590_v4 = vld [vmem:[#allocation5 + $0x10] sm:$0xff]   ;;  %v2597_v5 = vld [vmem:[#allocation5 + $0x80] sm:$0xff]   ;;  %vm866_vm1 = vcmask 1044480   ;;  %vm867_vm2 = vcmask 1045504   ;;  %v2808_v15 = vmov 65535  }
  0x29   :  { %2347 = vmatprep.mubr.msk.bf16.mxu0 %vm2807_vm0, %v2806_v1  ;;  %874 = vmatpush1.bf16.msra.mxu1 %v2588_v2  ;;  %v2591_v6 = vld [vmem:[#allocation5 + $0x18] sm:$0xff]   ;;  %v2599_v7 = vld [vmem:[#allocation5 + $0x88] sm:$0xff]   ;;  %v2592_v8 = vld [vmem:[#allocation5 + $0x20] sm:$0xff]   ;;  %v868_v16 = vsel %vm866_vm1, 4294967295, %v2808_v15  ;;  %vm778_vm3 = vcmask 875520  }
  0x2a   :  { %875 = vmatprep.subr.bf16.mxu1 %v2805_v0  ;;  %2334 = vmatpush3.bf16.msra.mxu0 %v2597_v5  ;;  %v2601_v9 = vld [vmem:[#allocation5 + $0x90] sm:$0xff]   ;;  %v2593_v10 = vld [vmem:[#allocation5 + $0x28] sm:$0xff]   ;;  %v2603_v11 = vld [vmem:[#allocation5 + $0x98] sm:$0xff]   ;;  %v869_v20 = vsel %vm867_vm2, %v868_v16, 0 }
  0x2b   :  { %2335 = vmatprep.subr.bf16.mxu0 %v2806_v1  ;;  %v2594_v12 = vld [vmem:[#allocation5 + $0x30] sm:$0xff]   ;;  %v2605_v13 = vld [vmem:[#allocation5 + $0xa0] sm:$0xff]   ;;  %v2595_v17 = vld [vmem:[#allocation5 + $0x38] sm:$0xff]  }
  0x2c   :  { %v2613_v14 = vld [vmem:[#allocation2 + $0x4] ss:$12 sps:$4 sm:$0xff]   ;;  %v2607_v18 = vld [vmem:[#allocation5 + $0xa8] sm:$0xff]   ;;  %v2609_v19 = vld [vmem:[#allocation5 + $0xb0] sm:$0x3f]  }
  0x2d   :  { %876 = vmatpush1.bf16.msra.mxu1 %v2589_v3  ;;  %905 = vmatprep.mubr.bf16.mxu1 %v2613_v14  ;;  %v2596_v21 = vld [vmem:[#allocation5 + $0x40] sm:$0xff]   ;;  %v871_v22 = vand.u32 %v2609_v19, %v869_v20  ;;  %v2598_v23 = vld [vmem:[#allocation5 + $0x48] sm:$0xff]   ;;  %v2600_v25 = vld [vmem:[#allocation5 + $0x50] sm:$0xff]  }
  0x2e   :  { %877 = vmatprep.subr.bf16.mxu1 %v2805_v0  ;;  %2336 = vmatpush3.bf16.msra.mxu0 %v2599_v7  ;;  %v2614_v24 = vld [vmem:[#allocation2 + $0x8] ss:$12 sps:$4 sm:$0xff]   ;;  %v2617_v27 = vld [vmem:[#allocation2 + $0x20] ss:$12 sps:$4 sm:$0xff]   ;;  %v2621_v30 = vld [vmem:[#allocation2 + $0x38] ss:$12 sps:$4 sm:$0xff]  }
  0x2f   :  { %2337 = vmatprep.subr.bf16.mxu0 %v2806_v1  ;;  %v2602_v26 = vld [vmem:[#allocation5 + $0x58] sm:$0xff]   ;;  %v2604_v28 = vld [vmem:[#allocation5 + $0x60] sm:$0xff]   ;;  %v2606_v29 = vld [vmem:[#allocation5 + $0x68] sm:$0xff]  }
  0x30   :  { %v2608_v31 = vld [vmem:[#allocation5 + $0x70] sm:$0xff]   ;;  %v2610_v32 = vld [vmem:[#allocation5 + $0x78] sm:$0xff]   ;;  %v2623_v41 = vld [vmem:[#allocation2 + $0x4c] ss:$12 sps:$4 sm:$0xff]  }
  0x31   :  { %878 = vmatpush1.bf16.msra.mxu1 %v2590_v4  ;;  %v2625_v33 = vld [vmem:[#allocation2 + $0x50] ss:$12 sps:$4 sm:$0xff]   ;;  %v2611_v34 = vld [vmem:[#allocation2] ss:$12 sps:$4 sm:$0xff]   ;;  %v2629_v36 = vld [vmem:[#allocation2 + $0x68] ss:$12 sps:$4 sm:$0xff]  }
  0x32   :  { %879 = vmatprep.subr.bf16.mxu1 %v2805_v0  ;;  %2338 = vmatpush3.bf16.msra.mxu0 %v2601_v9  ;;  %v2615_v35 = vld [vmem:[#allocation2 + $0x1c] ss:$12 sps:$4 sm:$0xff]   ;;  %v2618_v37 = vld [vmem:[#allocation2 + $0x18] ss:$12 sps:$4 sm:$0xff]   ;;  %v2619_v38 = vld [vmem:[#allocation2 + $0x34] ss:$12 sps:$4 sm:$0xff]  }
  0x33   :  { %2339 = vmatprep.subr.bf16.mxu0 %v2806_v1  ;;  %v2633_v39 = vld [vmem:[#allocation2 + $0x80] ss:$12 sps:$4 sm:$0xff]   ;;  %v2622_v40 = vld [vmem:[#allocation2 + $0x30] ss:$12 sps:$4 sm:$0xff]   ;;  %v2637_v42 = vld [vmem:[#allocation2 + $0x98] ss:$12 sps:$4 sm:$0xff]  }
  0x34   :  { %v2626_v43 = vld [vmem:[#allocation2 + $0x48] ss:$12 sps:$4 sm:$0xff]   ;;  %v2627_v44 = vld [vmem:[#allocation2 + $0x64] ss:$12 sps:$4 sm:$0xff]   ;;  %v2630_v46 = vld [vmem:[#allocation2 + $0x60] ss:$12 sps:$4 sm:$0xff]  }
  0x35   :  { %880 = vmatpush1.bf16.msra.mxu1 %v2591_v6  ;;  %v2641_v45 = vld [vmem:[#allocation2 + $0xb0] ss:$12 sps:$4 sm:$0xff]   ;;  %v2645_v48 = vld [vmem:[#allocation2 + $0xc8] ss:$12 sps:$4 sm:$0xff]   ;;  %v2634_v49 = vld [vmem:[#allocation2 + $0x78] ss:$12 sps:$4 sm:$0xff]  }
  0x36   :  { %881 = vmatprep.subr.bf16.mxu1 %v2805_v0  ;;  %2340 = vmatpush3.bf16.msra.mxu0 %v2603_v11  ;;  %v2631_v47 = vld [vmem:[#allocation2 + $0x7c] ss:$12 sps:$4 sm:$0xff]   ;;  %v2635_v50 = vld [vmem:[#allocation2 + $0x94] ss:$12 sps:$4 sm:$0xff]   ;;  %v2639_v53 = vld [vmem:[#allocation2 + $0xac] ss:$12 sps:$4 sm:$0xff]  }
  0x37   :  { %2341 = vmatprep.subr.bf16.mxu0 %v2806_v1  ;;  %v2649_v51 = vld [vmem:[#allocation2 + $0xe0] ss:$12 sps:$4 sm:$0xff]   ;;  %v2638_v52 = vld [vmem:[#allocation2 + $0x90] ss:$12 sps:$4 sm:$0xff]   ;;  %v2653_v54 = vld [vmem:[#allocation2 + $0xf8] ss:$12 sps:$4 sm:$0xff]  }
  0x38   :  { %v2642_v55 = vld [vmem:[#allocation2 + $0xa8] ss:$12 sps:$4 sm:$0xff]   ;;  %v2643_v56 = vld [vmem:[#allocation2 + $0xc4] ss:$12 sps:$4 sm:$0xff]   ;;  %v2646_v58 = vld [vmem:[#allocation2 + $0xc0] ss:$12 sps:$4 sm:$0xff]  }
  0x39   :  { %882 = vmatpush1.bf16.msra.mxu1 %v2592_v8  ;;  %v2657_v57 = vld [vmem:[#allocation2 + $0x110] ss:$12 sps:$4 sm:$0xff]   ;;  %v2661_v60 = vld [vmem:[#allocation2 + $0x128] ss:$12 sps:$4 sm:$0xff]   ;;  %v2650_v61 = vld [vmem:[#allocation2 + $0xd8] ss:$12 sps:$4 sm:$0xff]  }
  0x3a   :  { %883 = vmatprep.subr.bf16.mxu1 %v2805_v0  ;;  %2342 = vmatpush3.bf16.msra.mxu0 %v2605_v13  ;;  %v2647_v59 = vld [vmem:[#allocation2 + $0xdc] ss:$12 sps:$4 sm:$0xff]   ;;  %v2651_v62 = vld [vmem:[#allocation2 + $0xf4] ss:$12 sps:$4 sm:$0xff]   ;;  %v2655_v2 = vld [vmem:[#allocation2 + $0x10c] ss:$12 sps:$4 sm:$0xff]  }
  0x3b   :  { %2343 = vmatprep.subr.bf16.mxu0 %v2806_v1  ;;  %v2665_v63 = vld [vmem:[#allocation2 + $0x140] ss:$12 sps:$4 sm:$0xff]   ;;  %v2669_v3 = vld [vmem:[#allocation2 + $0x158] ss:$12 sps:$4 sm:$0xff]   ;;  %v2658_v4 = vld [vmem:[#allocation2 + $0x108] ss:$12 sps:$4 sm:$0xff]  }
  0x3c   :  { %v2659_v5 = vld [vmem:[#allocation2 + $0x124] ss:$12 sps:$4 sm:$0xff]   ;;  %v2662_v7 = vld [vmem:[#allocation2 + $0x120] ss:$12 sps:$4 sm:$0xff]   ;;  %v2663_v8 = vld [vmem:[#allocation2 + $0x13c] ss:$12 sps:$4 sm:$0xff]  }
  0x3d   :  { %884 = vmatpush1.bf16.msra.mxu1 %v2593_v10  ;;  %v2673_v6 = vld [vmem:[#allocation2 + $0x170] ss:$12 sps:$4 sm:$0xff]   ;;  %v2677_v9 = vld [vmem:[#allocation2 + $0x188] ss:$12 sps:$4 sm:$0xff]   ;;  %v2666_v10 = vld [vmem:[#allocation2 + $0x138] ss:$12 sps:$4 sm:$0xff]  }
  0x3e   :  { %885 = vmatprep.subr.bf16.mxu1 %v2805_v0  ;;  %2344 = vmatpush3.bf16.msra.mxu0 %v2607_v18  ;;  %v2667_v11 = vld [vmem:[#allocation2 + $0x154] ss:$12 sps:$4 sm:$0xff]   ;;  %v2670_v13 = vld [vmem:[#allocation2 + $0x150] ss:$12 sps:$4 sm:$0xff]   ;;  %v2671_v14 = vld [vmem:[#allocation2 + $0x16c] ss:$12 sps:$4 sm:$0xff]  }
  0x3f   :  { %2345 = vmatprep.subr.bf16.mxu0 %v2806_v1  ;;  %v2685_v15 = vld [vmem:[#allocation2 + $0x1b8] ss:$12 sps:$4 sm:$0xff]   ;;  %v2674_v16 = vld [vmem:[#allocation2 + $0x168] ss:$12 sps:$4 sm:$0xff]   ;;  %v2689_v18 = vld [vmem:[#allocation2 + $0x1d0] ss:$12 sps:$4 sm:$0xff]  }
  0x40   :  { %v2678_v19 = vld [vmem:[#allocation2 + $0x180] ss:$12 sps:$4 sm:$0xff]   ;;  %v2679_v20 = vld [vmem:[#allocation2 + $0x19c] ss:$12 sps:$4 sm:$0xff]  }
  0x41   :  { %886 = vmatpush1.bf16.msra.mxu1 %v2594_v12  ;;  %v2681_v12 = vld [vmem:[#allocation2 + $0x1a0] ss:$12 sps:$4 sm:$0xff]  }
  0x42   :  { %887 = vmatprep.subr.bf16.mxu1 %v2805_v0  ;;  %2346 = vmatpush3.bf16.msra.mxu0 %v871_v22  ;;  %v2682_v22 = vld [vmem:[#allocation2 + $0x198] ss:$12 sps:$4 sm:$0xff]  }
  0x45   :  { %888 = vmatpush1.bf16.msra.mxu1 %v2595_v17  ;;  %2348 = vmatmul.mubr.msk.bf16.vlgmr.msra.gmra.mrb[0].mxu0 %vm778_vm3, %v2614_v24  ;;  %v2675_v17 = vld [vmem:[#allocation2 + $0x184] ss:$12 sps:$4 sm:$0xff]   ;;  %v2697_v24 = vld [vmem:[#allocation2 + $0x200] ss:$12 sps:$4 sm:$0xff]  }
  0x46   :  { %889 = vmatprep.subr.bf16.mxu1 %v2805_v0  ;;  %2351 = vmatprep.mubr.msk.bf16.mxu0 %vm2807_vm0, %v2806_v1 }
  0x49   :  { %890 = vmatpush1.bf16.msra.mxu1 %v2596_v21  ;;  %v2693_v21 = vld [vmem:[#allocation2 + $0x1e8] ss:$12 sps:$4 sm:$0xff]  }
  0x4a   :  { %891 = vmatprep.subr.bf16.mxu1 %v2805_v0 }
  0x4d   :  { %892 = vmatpush1.bf16.msra.mxu1 %v2598_v23  ;;  %2352 = vmatmul.mubr.msk.bf16.gmra.mrb[4].mxu0 %vm778_vm3, %v2617_v27  ;;  %v2683_v23 = vld [vmem:[#allocation2 + $0x1b4] ss:$12 sps:$4 sm:$0xff]   ;;  %v2701_v27 = vld [vmem:[#allocation2 + $0x218] ss:$12 sps:$4 sm:$0xff]  }
  0x4e   :  { %893 = vmatprep.subr.bf16.mxu1 %v2805_v0  ;;  %2355 = vmatprep.mubr.msk.bf16.mxu0 %vm2807_vm0, %v2806_v1 }
  0x51   :  { %894 = vmatpush1.bf16.msra.mxu1 %v2600_v25  ;;  %v2686_v25 = vld [vmem:[#allocation2 + $0x1b0] ss:$12 sps:$4 sm:$0xff]  }
  0x52   :  { %895 = vmatprep.subr.bf16.mxu1 %v2805_v0 }
  0x55   :  { %896 = vmatpush1.bf16.msra.mxu1 %v2602_v26  ;;  %2356 = vmatmul.mubr.msk.bf16.gmra.mrb[8].mxu0 %vm778_vm3, %v2621_v30  ;;  %v2687_v26 = vld [vmem:[#allocation2 + $0x1cc] ss:$12 sps:$4 sm:$0xff]   ;;  %v2705_v30 = vld [vmem:[#allocation2 + $0x230] ss:$12 sps:$4 sm:$0xff]  }
  0x56   :  { %897 = vmatprep.subr.bf16.mxu1 %v2805_v0  ;;  %2359 = vmatprep.mubr.msk.bf16.mxu0 %vm2807_vm0, %v2806_v1 }
  0x59   :  { %898 = vmatpush1.bf16.msra.mxu1 %v2604_v28  ;;  %v2690_v28 = vld [vmem:[#allocation2 + $0x1c8] ss:$12 sps:$4 sm:$0xff]  }
  0x5a   :  { %899 = vmatprep.subr.bf16.mxu1 %v2805_v0 }
  0x5d   :  { %900 = vmatpush1.bf16.msra.mxu1 %v2606_v29  ;;  %2360 = vmatmul.mubr.msk.bf16.gmra.mrb[12].mxu0 %vm778_vm3, %v2625_v33  ;;  %v2691_v29 = vld [vmem:[#allocation2 + $0x1e4] ss:$12 sps:$4 sm:$0xff]   ;;  %v2709_v33 = vld [vmem:[#allocation2 + $0x248] ss:$12 sps:$4 sm:$0xff]  }
  0x5e   :  { %901 = vmatprep.subr.bf16.mxu1 %v2805_v0  ;;  %2363 = vmatprep.mubr.msk.bf16.mxu0 %vm2807_vm0, %v2806_v1 }
  0x61   :  { %902 = vmatpush1.bf16.msra.mxu1 %v2608_v31  ;;  %v2694_v31 = vld [vmem:[#allocation2 + $0x1e0] ss:$12 sps:$4 sm:$0xff]  }
  0x62   :  { %903 = vmatprep.subr.bf16.mxu1 %v2805_v0  ;;  %v2654_v0 = vld [vmem:[#allocation2 + $0xf0] ss:$12 sps:$4 sm:$0xff]  }
  0x65   :  { %904 = vmatpush1.bf16.msra.mxu1 %v2610_v32  ;;  %2364 = vmatmul.mubr.msk.bf16.gmra.mrb[16].mxu0 %vm778_vm3, %v2629_v36  ;;  %v2695_v32 = vld [vmem:[#allocation2 + $0x1fc] ss:$12 sps:$4 sm:$0xff]   ;;  %v2713_v36 = vld [vmem:[#allocation2 + $0x260] ss:$12 sps:$4 sm:$0xff]  }
  0x66   :  { %2367 = vmatprep.mubr.msk.bf16.mxu0 %vm2807_vm0, %v2806_v1 }
  0x68   :  { %906 = vmatmul.mubr.bf16.vlgmr.msra.gmra.mrb[0].mxu1 %v2611_v34  ;;  %v2698_v34 = vld [vmem:[#allocation2 + $0x1f8] ss:$12 sps:$4 sm:$0xff]  }
  0x69   :  { %913 = vmatprep.mubr.bf16.mxu1 %v2615_v35  ;;  %v2699_v35 = vld [vmem:[#allocation2 + $0x214] ss:$12 sps:$4 sm:$0xff]  }
  0x6d   :  { %2368 = vmatmul.mubr.msk.bf16.gmra.mrb[20].mxu0 %vm778_vm3, %v2633_v39  ;;  %v2717_v39 = vld [vmem:[#allocation2 + $0x278] ss:$12 sps:$4 sm:$0xff]  }
  0x6e   :  { %2371 = vmatprep.mubr.msk.bf16.mxu0 %vm2807_vm0, %v2806_v1 }
  0x70   :  { %914 = vmatmul.mubr.bf16.gmra.mrb[4].mxu1 %v2618_v37  ;;  %v2702_v37 = vld [vmem:[#allocation2 + $0x210] ss:$12 sps:$4 sm:$0xff]  }
  0x71   :  { %921 = vmatprep.mubr.bf16.mxu1 %v2619_v38  ;;  %v2703_v38 = vld [vmem:[#allocation2 + $0x22c] ss:$12 sps:$4 sm:$0xff]  }
  0x75   :  { %2372 = vmatmul.mubr.msk.bf16.gmra.mrb[24].mxu0 %vm778_vm3, %v2637_v42 }
  0x76   :  { %2375 = vmatprep.mubr.msk.bf16.mxu0 %vm2807_vm0, %v2806_v1 }
  0x78   :  { %922 = vmatmul.mubr.bf16.gmra.mrb[8].mxu1 %v2622_v40  ;;  %v2706_v40 = vld [vmem:[#allocation2 + $0x228] ss:$12 sps:$4 sm:$0xff]  }
  0x79   :  { %929 = vmatprep.mubr.bf16.mxu1 %v2623_v41  ;;  %v2707_v41 = vld [vmem:[#allocation2 + $0x244] ss:$12 sps:$4 sm:$0xff]  }
  0x7d   :  { %2376 = vmatmul.mubr.msk.bf16.gmra.mrb[28].mxu0 %vm778_vm3, %v2641_v45 }
  0x7e   :  { %2379 = vmatprep.mubr.msk.bf16.mxu0 %vm2807_vm0, %v2806_v1 }
  0x80   :  { %930 = vmatmul.mubr.bf16.gmra.mrb[12].mxu1 %v2626_v43 }
  0x81   :  { %937 = vmatprep.mubr.bf16.mxu1 %v2627_v44  ;;  %v2721_v44 = vld [vmem:[#allocation2 + $0x290] ss:$12 sps:$4 sm:$0xff]  }
  0x85   :  { %2380 = vmatmul.mubr.msk.bf16.gmra.mrb[32].mxu0 %vm778_vm3, %v2645_v48  ;;  %v2711_v48 = vld [vmem:[#allocation2 + $0x25c] ss:$12 sps:$4 sm:$0xff]  }
  0x86   :  { %2383 = vmatprep.mubr.msk.bf16.mxu0 %vm2807_vm0, %v2806_v1 }
  0x88   :  { %938 = vmatmul.mubr.bf16.gmra.mrb[16].mxu1 %v2630_v46 }
  0x89   :  { %945 = vmatprep.mubr.bf16.mxu1 %v2631_v47  ;;  %v2710_v47 = vld [vmem:[#allocation2 + $0x240] ss:$12 sps:$4 sm:$0xff]  }
  0x8d   :  { %2384 = vmatmul.mubr.msk.bf16.gmra.mrb[36].mxu0 %vm778_vm3, %v2649_v51  ;;  %v2724_v51 = vld [vmem:[#allocation2 + $0x2a8] ss:$0 sps:$4 sm:$0xff]  }
  0x8e   :  { %2387 = vmatprep.mubr.msk.bf16.mxu0 %vm2807_vm0, %v2806_v1 }
  0x90   :  { %946 = vmatmul.mubr.bf16.gmra.mrb[20].mxu1 %v2634_v49 }
  0x91   :  { %953 = vmatprep.mubr.bf16.mxu1 %v2635_v50 }
  0x95   :  { %2388 = vmatmul.mubr.msk.bf16.gmra.mrb[40].mxu0 %vm778_vm3, %v2653_v54  ;;  %v2714_v54 = vld [vmem:[#allocation2 + $0x258] ss:$12 sps:$4 sm:$0xff]  }
  0x96   :  { %2391 = vmatprep.mubr.msk.bf16.mxu0 %vm2807_vm0, %v2806_v1 }
  0x98   :  { %954 = vmatmul.mubr.bf16.gmra.mrb[24].mxu1 %v2638_v52 }
  0x99   :  { %961 = vmatprep.mubr.bf16.mxu1 %v2639_v53 }
  0x9d   :  { %2392 = vmatmul.mubr.msk.bf16.gmra.mrb[44].mxu0 %vm778_vm3, %v2657_v57 }
  0x9e   :  { %2395 = vmatprep.mubr.msk.bf16.mxu0 %vm2807_vm0, %v2806_v1 }
  0xa0   :  { %962 = vmatmul.mubr.bf16.gmra.mrb[28].mxu1 %v2642_v55  ;;  %v2715_v55 = vld [vmem:[#allocation2 + $0x274] ss:$12 sps:$4 sm:$0xff]  }
  0xa1   :  { %969 = vmatprep.mubr.bf16.mxu1 %v2643_v56 }
  0xa5   :  { %2396 = vmatmul.mubr.msk.bf16.gmra.mrb[48].mxu0 %vm778_vm3, %v2661_v60  ;;  %v2719_v60 = vld [vmem:[#allocation2 + $0x28c] ss:$12 sps:$4 sm:$0xff]  }
  0xa6   :  { %2399 = vmatprep.mubr.msk.bf16.mxu0 %vm2807_vm0, %v2806_v1 }
  0xa8   :  { %970 = vmatmul.mubr.bf16.gmra.mrb[32].mxu1 %v2646_v58 }
  0xa9   :  { %977 = vmatprep.mubr.bf16.mxu1 %v2647_v59 }
  0xad   :  { %2400 = vmatmul.mubr.msk.bf16.gmra.mrb[52].mxu0 %vm778_vm3, %v2665_v63 }
  0xae   :  { %2403 = vmatprep.mubr.msk.bf16.mxu0 %vm2807_vm0, %v2806_v1 }
  0xb0   :  { %978 = vmatmul.mubr.bf16.gmra.mrb[36].mxu1 %v2650_v61 }
  0xb1   :  { %985 = vmatprep.mubr.bf16.mxu1 %v2651_v62  ;;  %v2976_v62 = vld [vmem:[%s3202_s2] ss:$0 sm:$0xff] }
  0xb5   :  { %2404 = vmatmul.mubr.msk.bf16.gmra.mrb[56].mxu0 %vm778_vm3, %v2669_v3 }
  0xb6   :  { %2407 = vmatprep.mubr.msk.bf16.mxu0 %vm2807_vm0, %v2806_v1 }
  0xb8   :  { %986 = vmatmul.mubr.bf16.gmra.mrb[40].mxu1 %v2654_v0  ;;  %v156_v0 = vld [vmem:[#allocation2 + $0x2a0] sm:$0xff] }
  0xb9   :  { %993 = vmatprep.mubr.bf16.mxu1 %v2655_v2 }
  0xbd   :  { %2408 = vmatmul.mubr.msk.bf16.gmra.mrb[60].mxu0 %vm778_vm3, %v2673_v6 }
  0xbe   :  { %2411 = vmatprep.mubr.msk.bf16.mxu0 %vm2807_vm0, %v2806_v1 }
  0xc0   :  { %994 = vmatmul.mubr.bf16.gmra.mrb[44].mxu1 %v2658_v4 }
  0xc1   :  { %1001 = vmatprep.mubr.bf16.mxu1 %v2659_v5 }
  0xc5   :  { %2412 = vmatmul.mubr.msk.bf16.gmra.mrb[64].mxu0 %vm778_vm3, %v2677_v9  ;;  %v1962_v9 = vcombine.high %v156_v0, %v156_v0 }
  0xc6   :  { %2415 = vmatprep.mubr.msk.bf16.mxu0 %vm2807_vm0, %v2806_v1 }
  0xc8   :  { %1002 = vmatmul.mubr.bf16.gmra.mrb[48].mxu1 %v2662_v7  ;;  %v2722_v7 = vld [vmem:[#allocation2 + $0x288] ss:$12 sps:$4 sm:$0xff]  }
  0xc9   :  { %1009 = vmatprep.mubr.bf16.mxu1 %v2663_v8 }
  0xcd   :  { %2416 = vmatmul.mubr.msk.bf16.gmra.mrb[68].mxu0 %vm778_vm3, %v2681_v12 }
  0xce   :  { %2419 = vmatprep.mubr.msk.bf16.mxu0 %vm2807_vm0, %v2806_v1 }
  0xd0   :  { %1010 = vmatmul.mubr.bf16.gmra.mrb[52].mxu1 %v2666_v10 }
  0xd1   :  { %1017 = vmatprep.mubr.bf16.mxu1 %v2667_v11 }
  0xd5   :  { %2420 = vmatmul.mubr.msk.bf16.gmra.mrb[72].mxu0 %vm778_vm3, %v2685_v15 }
  0xd6   :  { %2423 = vmatprep.mubr.msk.bf16.mxu0 %vm2807_vm0, %v2806_v1 }
  0xd8   :  { %1018 = vmatmul.mubr.bf16.gmra.mrb[56].mxu1 %v2670_v13 }
  0xd9   :  { %1025 = vmatprep.mubr.bf16.mxu1 %v2671_v14 }
  0xdd   :  { %2424 = vmatmul.mubr.msk.bf16.gmra.mrb[76].mxu0 %vm778_vm3, %v2689_v18 }
  0xde   :  { %2427 = vmatprep.mubr.msk.bf16.mxu0 %vm2807_vm0, %v2806_v1 }
  0xe0   :  { %1026 = vmatmul.mubr.bf16.gmra.mrb[60].mxu1 %v2674_v16 }
  0xe1   :  { %1033 = vmatprep.mubr.bf16.mxu1 %v2675_v17 }
  0xe5   :  { %2428 = vmatmul.mubr.msk.bf16.gmra.mrb[80].mxu0 %vm778_vm3, %v2693_v21 }
  0xe6   :  { %2431 = vmatprep.mubr.msk.bf16.mxu0 %vm2807_vm0, %v2806_v1 }
  0xe8   :  { %1034 = vmatmul.mubr.bf16.gmra.mrb[64].mxu1 %v2678_v19 }
  0xe9   :  { %1041 = vmatprep.mubr.bf16.mxu1 %v2679_v20 }
  0xed   :  { %2432 = vmatmul.mubr.msk.bf16.gmra.mrb[84].mxu0 %vm778_vm3, %v2697_v24 }
  0xee   :  { %2435 = vmatprep.mubr.msk.bf16.mxu0 %vm2807_vm0, %v2806_v1 }
  0xf0   :  { %1042 = vmatmul.mubr.bf16.gmra.mrb[68].mxu1 %v2682_v22 }
  0xf1   :  { %1049 = vmatprep.mubr.bf16.mxu1 %v2683_v23 }
  0xf5   :  { %2436 = vmatmul.mubr.msk.bf16.gmra.mrb[88].mxu0 %vm778_vm3, %v2701_v27 }
  0xf6   :  { %2439 = vmatprep.mubr.msk.bf16.mxu0 %vm2807_vm0, %v2806_v1 }
  0xf8   :  { %1050 = vmatmul.mubr.bf16.gmra.mrb[72].mxu1 %v2686_v25  ;;  %v1961_v25 = vcombine.low %v156_v0, %v156_v0 }
  0xf9   :  { %1057 = vmatprep.mubr.bf16.mxu1 %v2687_v26 }
  0xfd   :  { %2440 = vmatmul.mubr.msk.bf16.gmra.mrb[92].mxu0 %vm778_vm3, %v2705_v30 }
  0xfe   :  { %2443 = vmatprep.mubr.msk.bf16.mxu0 %vm2807_vm0, %v2806_v1 }
 0x100   :  { %1058 = vmatmul.mubr.bf16.gmra.mrb[76].mxu1 %v2690_v28 }
 0x101   :  { %1065 = vmatprep.mubr.bf16.mxu1 %v2691_v29 }
 0x105   :  { %2444 = vmatmul.mubr.msk.bf16.gmra.mrb[96].mxu0 %vm778_vm3, %v2709_v33 }
 0x106   :  { %2447 = vmatprep.mubr.msk.bf16.mxu0 %vm2807_vm0, %v2806_v1 }
 0x108   :  { %1066 = vmatmul.mubr.bf16.gmra.mrb[80].mxu1 %v2694_v31 }
 0x109   :  { %1073 = vmatprep.mubr.bf16.mxu1 %v2695_v32 }
 0x10d   :  { %2448 = vmatmul.mubr.msk.bf16.gmra.mrb[100].mxu0 %vm778_vm3, %v2713_v36 }
 0x10e   :  { %2451 = vmatprep.mubr.msk.bf16.mxu0 %vm2807_vm0, %v2806_v1 }
 0x110   :  { %1074 = vmatmul.mubr.bf16.gmra.mrb[84].mxu1 %v2698_v34 }
 0x111   :  { %1081 = vmatprep.mubr.bf16.mxu1 %v2699_v35 }
 0x115   :  { %2452 = vmatmul.mubr.msk.bf16.gmra.mrb[104].mxu0 %vm778_vm3, %v2717_v39 }
 0x116   :  { %2455 = vmatprep.mubr.msk.bf16.mxu0 %vm2807_vm0, %v2806_v1 }
 0x118   :  { %1082 = vmatmul.mubr.bf16.gmra.mrb[88].mxu1 %v2702_v37  ;;  %v1171_v42 = vpop.f32.mrb[0].mxu0 }
 0x119   :  { %1089 = vmatprep.mubr.bf16.mxu1 %v2703_v38  ;;  %v2349_v43 = vpop.f32.mrb[1].mxu0 }
 0x11a   :  { %v1174_v45 = vpop.f32.mrb[2].mxu0 }
 0x11b   :  { %v2350_v46 = vpop.f32.mrb[3].mxu0 }
 0x11d   :  { %2456 = vmatmul.mubr.msk.bf16.gmra.mrb[108].mxu0 %vm778_vm3, %v2721_v44 }
 0x11e   :  { %2459 = vmatprep.mubr.msk.bf16.mxu0 %vm2807_vm0, %v2806_v1  ;;  %v2718_v1 = vld [vmem:[#allocation2 + $0x270] ss:$12 sps:$4 sm:$0xff]  }
 0x120   :  { %1090 = vmatmul.mubr.bf16.gmra.mrb[92].mxu1 %v2706_v40  ;;  %v1179_v49 = vpop.f32.mrb[4].mxu0 }
 0x121   :  { %1097 = vmatprep.mubr.bf16.mxu1 %v2707_v41  ;;  %v2353_v50 = vpop.f32.mrb[5].mxu0 }
 0x122   :  { %v1182_v52 = vpop.f32.mrb[6].mxu0 }
 0x123   :  { %v2354_v53 = vpop.f32.mrb[7].mxu0 }
 0x125   :  { %2460 = vmatmul.mubr.msk.bf16.gmra.mrb[112].mxu0 %vm778_vm3, %v2724_v51 }
 0x128   :  { %1098 = vmatmul.mubr.bf16.gmra.mrb[96].mxu1 %v2710_v47  ;;  %v2967_v56 = vpop.f32.mrb[8].mxu0 }
 0x129   :  { %1105 = vmatprep.mubr.bf16.mxu1 %v2711_v48  ;;  %v2357_v57 = vpop.f32.mrb[9].mxu0 }
 0x12a   :  { %v2969_v58 = vpop.f32.mrb[10].mxu0 }
 0x12b   :  { %v2358_v59 = vpop.f32.mrb[11].mxu0 }
 0x130   :  { %1106 = vmatmul.mubr.bf16.gmra.mrb[100].mxu1 %v2714_v54  ;;  %v2971_v61 = vpop.f32.mrb[12].mxu0 }
 0x131   :  { %1113 = vmatprep.mubr.bf16.mxu1 %v2715_v55  ;;  %v2361_v63 = vpop.f32.mrb[13].mxu0 }
 0x132   :  { %v2978_v2 = vpop.f32.mrb[14].mxu0 }
 0x133   :  { %v2362_v4 = vpop.f32.mrb[15].mxu0 }
 0x138   :  { %1114 = vmatmul.mubr.bf16.gmra.mrb[104].mxu1 %v2718_v1  ;;  %v2982_v15 = vpop.f32.mrb[16].mxu0 }
 0x139   :  { %1121 = vmatprep.mubr.bf16.mxu1 %v2719_v60  ;;  %v2365_v16 = vpop.f32.mrb[17].mxu0 }
 0x13a   :  { %v2984_v18 = vpop.f32.mrb[18].mxu0 }
 0x13b   :  { %v907_v3 = vpop.f32.mrb[0].mxu1  ;;  %v2366_v20 = vpop.f32.mrb[19].mxu0 }
 0x13c   :  { %v908_v5 = vadd.f32 %v2976_v62, %v907_v3  ;;  %v909_v6 = vpop.f32.mrb[1].mxu1 }
 0x13d   :  { %v910_v8 = vpop.f32.mrb[2].mxu1 }
 0x13e   :  { %v1172_v10 = vadd.f32 %v1171_v42, %v908_v5  ;;  %v911_v11 = vadd.f32 %v2976_v62, %v910_v8  ;;  %v912_v12 = vpop.f32.mrb[3].mxu1 }
 0x140   :  { %v1458_v13 = vmul.f32 0.01, %v1172_v10  ;;  %v1175_v14 = vadd.f32 %v1174_v45, %v911_v11  ;;  %1122 = vmatmul.mubr.bf16.gmra.mrb[108].mxu1 %v2722_v7  ;;  %vm1401_vm4 = vcmp.ge.f32.partialorder %v1172_v10, 0.0  ;;  %v2988_v33 = vpop.f32.mrb[20].mxu0 }
 0x141   :  { %1129 = vmatprep.mubr.bf16.mxu1 %v1962_v9  ;;  %v2369_v34 = vpop.f32.mrb[21].mxu0 }
 0x142   :  { %vm1402_vm5 = vcmp.ge.f32.partialorder %v1175_v14, 0.0  ;;  %v1459_v17 = vmul.f32 0.01, %v1175_v14  ;;  %v1515_v21 = vsel %vm1401_vm4, %v1172_v10, %v1458_v13  ;;  %v2990_v36 = vpop.f32.mrb[22].mxu0 }
 0x143   :  { %v915_v19 = vpop.f32.mrb[4].mxu1  ;;  %v2370_v38 = vpop.f32.mrb[23].mxu0 }
 0x144   :  { %v1516_v22 = vsel %vm1402_vm5, %v1175_v14, %v1459_v17  ;;  %v916_v23 = vadd.f32 %v2976_v62, %v915_v19  ;;  %v917_v24 = vpop.f32.mrb[5].mxu1 }
 0x145   :  { %v2133_v26 = vpack.c.bf16 %v1516_v22, %v1515_v21  ;;  %v918_v27 = vpop.f32.mrb[6].mxu1 }
 0x146   :  { %v1180_v28 = vadd.f32 %v1179_v49, %v916_v23  ;;  %v919_v29 = vadd.f32 %v2976_v62, %v918_v27  ;;  %v920_v30 = vpop.f32.mrb[7].mxu1 }
 0x147   :  { %2134 = vst [vmem:[#allocation7] sm:$0xff] %v2133_v26  }
 0x148   :  { %v1460_v31 = vmul.f32 0.01, %v1180_v28  ;;  %v1183_v32 = vadd.f32 %v1182_v52, %v919_v29  ;;  %1130 = vmatmul.mubr.bf16.gmra.mrb[112].mxu1 %v1961_v25  ;;  %vm1403_vm6 = vcmp.ge.f32.partialorder %v1180_v28, 0.0  ;;  %v2996_v50 = vpop.f32.mrb[24].mxu0 }
 0x149   :  { %v2373_v51 = vpop.f32.mrb[25].mxu0 }
 0x14a   :  { %vm1404_vm7 = vcmp.ge.f32.partialorder %v1183_v32, 0.0  ;;  %v1461_v35 = vmul.f32 0.01, %v1183_v32  ;;  %v1517_v39 = vsel %vm1403_vm6, %v1180_v28, %v1460_v31  ;;  %v2998_v53 = vpop.f32.mrb[26].mxu0 }
 0x14b   :  { %v923_v37 = vpop.f32.mrb[8].mxu1  ;;  %v2374_v55 = vpop.f32.mrb[27].mxu0 }
 0x14c   :  { %v1518_v40 = vsel %vm1404_vm7, %v1183_v32, %v1461_v35  ;;  %v924_v41 = vadd.f32 %v2976_v62, %v923_v37  ;;  %v925_v42 = vpop.f32.mrb[9].mxu1 }
 0x14d   :  { %v2138_v43 = vpack.c.bf16 %v1518_v40, %v1517_v39  ;;  %v926_v44 = vpop.f32.mrb[10].mxu1 }
 0x14e   :  { %v1188_v45 = vadd.f32 %v2967_v56, %v924_v41  ;;  %v927_v46 = vadd.f32 %v2976_v62, %v926_v44  ;;  %v928_v47 = vpop.f32.mrb[11].mxu1 }
 0x14f   :  { %2270 = vst [vmem:[#allocation7 + $0x8] sm:$0xff] %v2138_v43  }
 0x150   :  { %v1462_v48 = vmul.f32 0.01, %v1188_v45  ;;  %v1191_v49 = vadd.f32 %v2969_v58, %v927_v46  ;;  %vm1405_vm8 = vcmp.ge.f32.partialorder %v1188_v45, 0.0  ;;  %v3004_v6 = vpop.f32.mrb[28].mxu0 }
 0x151   :  { %v2377_v7 = vpop.f32.mrb[29].mxu0 }
 0x152   :  { %vm1406_vm9 = vcmp.ge.f32.partialorder %v1191_v49, 0.0  ;;  %v1463_v52 = vmul.f32 0.01, %v1191_v49  ;;  %v1519_v57 = vsel %vm1405_vm8, %v1188_v45, %v1462_v48  ;;  %v3006_v9 = vpop.f32.mrb[30].mxu0 }
 0x153   :  { %v931_v54 = vpop.f32.mrb[12].mxu1  ;;  %v2378_v11 = vpop.f32.mrb[31].mxu0 }
 0x154   :  { %v1520_v59 = vsel %vm1406_vm9, %v1191_v49, %v1463_v52  ;;  %v932_v56 = vadd.f32 %v2976_v62, %v931_v54  ;;  %v933_v1 = vpop.f32.mrb[13].mxu1 }
 0x155   :  { %v2143_v60 = vpack.c.bf16 %v1520_v59, %v1519_v57  ;;  %v934_v63 = vpop.f32.mrb[14].mxu1 }
 0x156   :  { %v1196_v0 = vadd.f32 %v2971_v61, %v932_v56  ;;  %v935_v58 = vadd.f32 %v2976_v62, %v934_v63  ;;  %v936_v3 = vpop.f32.mrb[15].mxu1 }
 0x157   :  { %2271 = vst [vmem:[#allocation7 + $0x10] sm:$0xff] %v2143_v60  }
 0x158   :  { %v1464_v4 = vmul.f32 0.01, %v1196_v0  ;;  %v1199_v5 = vadd.f32 %v2978_v2, %v935_v58  ;;  %vm1407_vm10 = vcmp.ge.f32.partialorder %v1196_v0, 0.0  ;;  %v3012_v23 = vpop.f32.mrb[32].mxu0 }
 0x159   :  { %v2381_v24 = vpop.f32.mrb[33].mxu0 }
 0x15a   :  { %vm1408_vm11 = vcmp.ge.f32.partialorder %v1199_v5, 0.0  ;;  %v1465_v8 = vmul.f32 0.01, %v1199_v5  ;;  %v1521_v12 = vsel %vm1407_vm10, %v1196_v0, %v1464_v4  ;;  %v3014_v26 = vpop.f32.mrb[34].mxu0 }
 0x15b   :  { %v939_v10 = vpop.f32.mrb[16].mxu1  ;;  %v2382_v28 = vpop.f32.mrb[35].mxu0 }
 0x15c   :  { %v1522_v13 = vsel %vm1408_vm11, %v1199_v5, %v1465_v8  ;;  %v940_v61 = vadd.f32 %v2976_v62, %v939_v10  ;;  %v941_v14 = vpop.f32.mrb[17].mxu1 }
 0x15d   :  { %v2148_v16 = vpack.c.bf16 %v1522_v13, %v1521_v12  ;;  %v942_v17 = vpop.f32.mrb[18].mxu1 }
 0x15e   :  { %v1204_v19 = vadd.f32 %v2982_v15, %v940_v61  ;;  %v943_v2 = vadd.f32 %v2976_v62, %v942_v17  ;;  %v944_v20 = vpop.f32.mrb[19].mxu1 }
 0x15f   :  { %2272 = vst [vmem:[#allocation7 + $0x18] sm:$0xff] %v2148_v16  }
 0x160   :  { %v1466_v21 = vmul.f32 0.01, %v1204_v19  ;;  %v1207_v22 = vadd.f32 %v2984_v18, %v943_v2  ;;  %vm1409_vm12 = vcmp.ge.f32.partialorder %v1204_v19, 0.0  ;;  %v3020_v40 = vpop.f32.mrb[36].mxu0 }
 0x161   :  { %v2385_v41 = vpop.f32.mrb[37].mxu0 }
 0x162   :  { %vm1410_vm13 = vcmp.ge.f32.partialorder %v1207_v22, 0.0  ;;  %v1467_v25 = vmul.f32 0.01, %v1207_v22  ;;  %v1523_v29 = vsel %vm1409_vm12, %v1204_v19, %v1466_v21  ;;  %v3022_v43 = vpop.f32.mrb[38].mxu0 }
 0x163   :  { %v947_v27 = vpop.f32.mrb[20].mxu1  ;;  %v2386_v45 = vpop.f32.mrb[39].mxu0 }
 0x164   :  { %v1524_v30 = vsel %vm1410_vm13, %v1207_v22, %v1467_v25  ;;  %v948_v15 = vadd.f32 %v2976_v62, %v947_v27  ;;  %v949_v31 = vpop.f32.mrb[21].mxu1 }
 0x165   :  { %v2153_v32 = vpack.c.bf16 %v1524_v30, %v1523_v29  ;;  %v950_v34 = vpop.f32.mrb[22].mxu1 }
 0x166   :  { %v1212_v35 = vadd.f32 %v2988_v33, %v948_v15  ;;  %v951_v18 = vadd.f32 %v2976_v62, %v950_v34  ;;  %v952_v37 = vpop.f32.mrb[23].mxu1 }
 0x167   :  { %2273 = vst [vmem:[#allocation7 + $0x20] sm:$0xff] %v2153_v32  }
 0x168   :  { %v1468_v38 = vmul.f32 0.01, %v1212_v35  ;;  %v1215_v39 = vadd.f32 %v2990_v36, %v951_v18  ;;  %vm1411_vm14 = vcmp.ge.f32.partialorder %v1212_v35, 0.0  ;;  %v3028_v59 = vpop.f32.mrb[40].mxu0 }
 0x169   :  { %v2389_v56 = vpop.f32.mrb[41].mxu0 }
 0x16a   :  { %vm1412_vm15 = vcmp.ge.f32.partialorder %v1215_v39, 0.0  ;;  %v1469_v42 = vmul.f32 0.01, %v1215_v39  ;;  %v1525_v46 = vsel %vm1411_vm14, %v1212_v35, %v1468_v38  ;;  %v3030_v60 = vpop.f32.mrb[42].mxu0 }
 0x16b   :  { %v955_v44 = vpop.f32.mrb[24].mxu1  ;;  %v2390_v0 = vpop.f32.mrb[43].mxu0 }
 0x16c   :  { %v1526_v47 = vsel %vm1412_vm15, %v1215_v39, %v1469_v42  ;;  %v956_v33 = vadd.f32 %v2976_v62, %v955_v44  ;;  %v957_v48 = vpop.f32.mrb[25].mxu1 }
 0x16d   :  { %v2158_v49 = vpack.c.bf16 %v1526_v47, %v1525_v46  ;;  %v958_v51 = vpop.f32.mrb[26].mxu1 }
 0x16e   :  { %v1220_v52 = vadd.f32 %v2996_v50, %v956_v33  ;;  %v959_v36 = vadd.f32 %v2976_v62, %v958_v51  ;;  %v960_v54 = vpop.f32.mrb[27].mxu1 }
 0x16f   :  { %2274 = vst [vmem:[#allocation7 + $0x28] sm:$0xff] %v2158_v49  }
 0x170   :  { %v1470_v55 = vmul.f32 0.01, %v1220_v52  ;;  %v1223_v57 = vadd.f32 %v2998_v53, %v959_v36  ;;  %vm1413_vm0 = vcmp.ge.f32.partialorder %v1220_v52, 0.0  ;;  %v3036_v13 = vpop.f32.mrb[44].mxu0 }
 0x171   :  { %v2393_v61 = vpop.f32.mrb[45].mxu0 }
 0x172   :  { %vm1414_vm1 = vcmp.ge.f32.partialorder %v1223_v57, 0.0  ;;  %v1471_v1 = vmul.f32 0.01, %v1223_v57  ;;  %v1527_v58 = vsel %vm1413_vm0, %v1220_v52, %v1470_v55  ;;  %v3038_v16 = vpop.f32.mrb[46].mxu0 }
 0x173   :  { %v963_v63 = vpop.f32.mrb[28].mxu1  ;;  %v2394_v19 = vpop.f32.mrb[47].mxu0 }
 0x174   :  { %v1528_v3 = vsel %vm1414_vm1, %v1223_v57, %v1471_v1  ;;  %v964_v50 = vadd.f32 %v2976_v62, %v963_v63  ;;  %v965_v4 = vpop.f32.mrb[29].mxu1 }
 0x175   :  { %v2163_v5 = vpack.c.bf16 %v1528_v3, %v1527_v58  ;;  %v966_v7 = vpop.f32.mrb[30].mxu1 }
 0x176   :  { %v1228_v8 = vadd.f32 %v3004_v6, %v964_v50  ;;  %v967_v53 = vadd.f32 %v2976_v62, %v966_v7  ;;  %v968_v10 = vpop.f32.mrb[31].mxu1 }
 0x177   :  { %2275 = vst [vmem:[#allocation7 + $0x30] sm:$0xff] %v2163_v5  }
 0x178   :  { %v1472_v11 = vmul.f32 0.01, %v1228_v8  ;;  %v1231_v12 = vadd.f32 %v3006_v9, %v967_v53  ;;  %vm1415_vm2 = vcmp.ge.f32.partialorder %v1228_v8, 0.0  ;;  %v3044_v30 = vpop.f32.mrb[48].mxu0 }
 0x179   :  { %v2397_v15 = vpop.f32.mrb[49].mxu0 }
 0x17a   :  { %vm1416_vm3 = vcmp.ge.f32.partialorder %v1231_v12, 0.0  ;;  %v1473_v14 = vmul.f32 0.01, %v1231_v12  ;;  %v1529_v2 = vsel %vm1415_vm2, %v1228_v8, %v1472_v11  ;;  %v3046_v32 = vpop.f32.mrb[50].mxu0 }
 0x17b   :  { %v971_v17 = vpop.f32.mrb[32].mxu1  ;;  %v2398_v35 = vpop.f32.mrb[51].mxu0 }
 0x17c   :  { %v1530_v20 = vsel %vm1416_vm3, %v1231_v12, %v1473_v14  ;;  %v972_v6 = vadd.f32 %v2976_v62, %v971_v17  ;;  %v973_v21 = vpop.f32.mrb[33].mxu1 }
 0x17d   :  { %v2168_v22 = vpack.c.bf16 %v1530_v20, %v1529_v2  ;;  %v974_v24 = vpop.f32.mrb[34].mxu1 }
 0x17e   :  { %v1236_v25 = vadd.f32 %v3012_v23, %v972_v6  ;;  %v975_v9 = vadd.f32 %v2976_v62, %v974_v24  ;;  %v976_v27 = vpop.f32.mrb[35].mxu1 }
 0x17f   :  { %2276 = vst [vmem:[#allocation7 + $0x38] sm:$0xff] %v2168_v22  }
 0x180   :  { %v1474_v28 = vmul.f32 0.01, %v1236_v25  ;;  %v1239_v29 = vadd.f32 %v3014_v26, %v975_v9  ;;  %vm1417_vm4 = vcmp.ge.f32.partialorder %v1236_v25, 0.0  ;;  %v3052_v47 = vpop.f32.mrb[52].mxu0 }
 0x181   :  { %v2401_v33 = vpop.f32.mrb[53].mxu0 }
 0x182   :  { %vm1418_vm5 = vcmp.ge.f32.partialorder %v1239_v29, 0.0  ;;  %v1475_v31 = vmul.f32 0.01, %v1239_v29  ;;  %v1531_v18 = vsel %vm1417_vm4, %v1236_v25, %v1474_v28  ;;  %v3054_v49 = vpop.f32.mrb[54].mxu0 }
 0x183   :  { %v979_v34 = vpop.f32.mrb[36].mxu1  ;;  %v2402_v52 = vpop.f32.mrb[55].mxu0 }
 0x184   :  { %v1532_v37 = vsel %vm1418_vm5, %v1239_v29, %v1475_v31  ;;  %v980_v23 = vadd.f32 %v2976_v62, %v979_v34  ;;  %v981_v38 = vpop.f32.mrb[37].mxu1 }
 0x185   :  { %v2173_v39 = vpack.c.bf16 %v1532_v37, %v1531_v18  ;;  %v982_v41 = vpop.f32.mrb[38].mxu1 }
 0x186   :  { %v1244_v42 = vadd.f32 %v3020_v40, %v980_v23  ;;  %v983_v26 = vadd.f32 %v2976_v62, %v982_v41  ;;  %v984_v44 = vpop.f32.mrb[39].mxu1 }
 0x187   :  { %2277 = vst [vmem:[#allocation7 + $0x40] sm:$0xff] %v2173_v39  }
 0x188   :  { %v1476_v45 = vmul.f32 0.01, %v1244_v42  ;;  %v1247_v46 = vadd.f32 %v3022_v43, %v983_v26  ;;  %vm1419_vm6 = vcmp.ge.f32.partialorder %v1244_v42, 0.0  ;;  %v3060_v3 = vpop.f32.mrb[56].mxu0 }
 0x189   :  { %v2405_v50 = vpop.f32.mrb[57].mxu0 }
 0x18a   :  { %vm1420_vm7 = vcmp.ge.f32.partialorder %v1247_v46, 0.0  ;;  %v1477_v48 = vmul.f32 0.01, %v1247_v46  ;;  %v1533_v36 = vsel %vm1419_vm6, %v1244_v42, %v1476_v45  ;;  %v3062_v5 = vpop.f32.mrb[58].mxu0 }
 0x18b   :  { %v987_v51 = vpop.f32.mrb[40].mxu1  ;;  %v2406_v8 = vpop.f32.mrb[59].mxu0 }
 0x18c   :  { %v1534_v54 = vsel %vm1420_vm7, %v1247_v46, %v1477_v48  ;;  %v988_v40 = vadd.f32 %v2976_v62, %v987_v51  ;;  %v989_v55 = vpop.f32.mrb[41].mxu1 }
 0x18d   :  { %v2178_v57 = vpack.c.bf16 %v1534_v54, %v1533_v36  ;;  %v990_v56 = vpop.f32.mrb[42].mxu1 }
 0x18e   :  { %v1252_v1 = vadd.f32 %v3028_v59, %v988_v40  ;;  %v991_v43 = vadd.f32 %v2976_v62, %v990_v56  ;;  %v992_v63 = vpop.f32.mrb[43].mxu1 }
 0x18f   :  { %2278 = vst [vmem:[#allocation7 + $0x48] sm:$0xff] %v2178_v57  }
 0x190   :  { %v1478_v0 = vmul.f32 0.01, %v1252_v1  ;;  %v1255_v58 = vadd.f32 %v3030_v60, %v991_v43  ;;  %vm1421_vm8 = vcmp.ge.f32.partialorder %v1252_v1, 0.0  ;;  %v3068_v20 = vpop.f32.mrb[60].mxu0 }
 0x191   :  { %v2409_v6 = vpop.f32.mrb[61].mxu0 }
 0x192   :  { %vm1422_vm9 = vcmp.ge.f32.partialorder %v1255_v58, 0.0  ;;  %v1479_v4 = vmul.f32 0.01, %v1255_v58  ;;  %v1535_v53 = vsel %vm1421_vm8, %v1252_v1, %v1478_v0  ;;  %v3070_v22 = vpop.f32.mrb[62].mxu0 }
 0x193   :  { %v995_v7 = vpop.f32.mrb[44].mxu1  ;;  %v2410_v25 = vpop.f32.mrb[63].mxu0 }
 0x194   :  { %v1536_v10 = vsel %vm1422_vm9, %v1255_v58, %v1479_v4  ;;  %v996_v59 = vadd.f32 %v2976_v62, %v995_v7  ;;  %v997_v11 = vpop.f32.mrb[45].mxu1 }
 0x195   :  { %v2183_v12 = vpack.c.bf16 %v1536_v10, %v1535_v53  ;;  %v998_v61 = vpop.f32.mrb[46].mxu1 }
 0x196   :  { %v1260_v14 = vadd.f32 %v3036_v13, %v996_v59  ;;  %v999_v60 = vadd.f32 %v2976_v62, %v998_v61  ;;  %v1000_v17 = vpop.f32.mrb[47].mxu1 }
 0x197   :  { %2279 = vst [vmem:[#allocation7 + $0x50] sm:$0xff] %v2183_v12  }
 0x198   :  { %v1480_v19 = vmul.f32 0.01, %v1260_v14  ;;  %v1263_v2 = vadd.f32 %v3038_v16, %v999_v60  ;;  %vm1423_vm10 = vcmp.ge.f32.partialorder %v1260_v14, 0.0  ;;  %v3076_v37 = vpop.f32.mrb[64].mxu0 }
 0x199   :  { %v2413_v23 = vpop.f32.mrb[65].mxu0 }
 0x19a   :  { %vm1424_vm11 = vcmp.ge.f32.partialorder %v1263_v2, 0.0  ;;  %v1481_v21 = vmul.f32 0.01, %v1263_v2  ;;  %v1537_v9 = vsel %vm1423_vm10, %v1260_v14, %v1480_v19  ;;  %v3078_v39 = vpop.f32.mrb[66].mxu0 }
 0x19b   :  { %v1003_v24 = vpop.f32.mrb[48].mxu1  ;;  %v2414_v42 = vpop.f32.mrb[67].mxu0 }
 0x19c   :  { %v1538_v27 = vsel %vm1424_vm11, %v1263_v2, %v1481_v21  ;;  %v1004_v13 = vadd.f32 %v2976_v62, %v1003_v24  ;;  %v1005_v28 = vpop.f32.mrb[49].mxu1 }
 0x19d   :  { %v2188_v29 = vpack.c.bf16 %v1538_v27, %v1537_v9  ;;  %v1006_v15 = vpop.f32.mrb[50].mxu1 }
 0x19e   :  { %v1268_v31 = vadd.f32 %v3044_v30, %v1004_v13  ;;  %v1007_v16 = vadd.f32 %v2976_v62, %v1006_v15  ;;  %v1008_v34 = vpop.f32.mrb[51].mxu1 }
 0x19f   :  { %2280 = vst [vmem:[#allocation7 + $0x58] sm:$0xff] %v2188_v29  }
 0x1a0   :  { %v1482_v35 = vmul.f32 0.01, %v1268_v31  ;;  %v1271_v18 = vadd.f32 %v3046_v32, %v1007_v16  ;;  %vm1425_vm12 = vcmp.ge.f32.partialorder %v1268_v31, 0.0  ;;  %v3084_v54 = vpop.f32.mrb[68].mxu0 }
 0x1a1   :  { %v2417_v40 = vpop.f32.mrb[69].mxu0 }
 0x1a2   :  { %vm1426_vm13 = vcmp.ge.f32.partialorder %v1271_v18, 0.0  ;;  %v1483_v38 = vmul.f32 0.01, %v1271_v18  ;;  %v1539_v26 = vsel %vm1425_vm12, %v1268_v31, %v1482_v35  ;;  %v3086_v57 = vpop.f32.mrb[70].mxu0 }
 0x1a3   :  { %v1011_v41 = vpop.f32.mrb[52].mxu1  ;;  %v2418_v1 = vpop.f32.mrb[71].mxu0 }
 0x1a4   :  { %v1540_v44 = vsel %vm1426_vm13, %v1271_v18, %v1483_v38  ;;  %v1012_v30 = vadd.f32 %v2976_v62, %v1011_v41  ;;  %v1013_v45 = vpop.f32.mrb[53].mxu1 }
 0x1a5   :  { %v2193_v46 = vpack.c.bf16 %v1540_v44, %v1539_v26  ;;  %v1014_v33 = vpop.f32.mrb[54].mxu1 }
 0x1a6   :  { %v1276_v48 = vadd.f32 %v3052_v47, %v1012_v30  ;;  %v1015_v32 = vadd.f32 %v2976_v62, %v1014_v33  ;;  %v1016_v51 = vpop.f32.mrb[55].mxu1 }
 0x1a7   :  { %2281 = vst [vmem:[#allocation7 + $0x60] sm:$0xff] %v2193_v46  }
 0x1a8   :  { %v1484_v52 = vmul.f32 0.01, %v1276_v48  ;;  %v1279_v36 = vadd.f32 %v3054_v49, %v1015_v32  ;;  %vm1427_vm14 = vcmp.ge.f32.partialorder %v1276_v48, 0.0  ;;  %v3092_v10 = vpop.f32.mrb[72].mxu0 }
 0x1a9   :  { %v2421_v59 = vpop.f32.mrb[73].mxu0 }
 0x1aa   :  { %vm1428_vm15 = vcmp.ge.f32.partialorder %v1279_v36, 0.0  ;;  %v1485_v55 = vmul.f32 0.01, %v1279_v36  ;;  %v1541_v43 = vsel %vm1427_vm14, %v1276_v48, %v1484_v52  ;;  %v3094_v12 = vpop.f32.mrb[74].mxu0 }
 0x1ab   :  { %v1019_v56 = vpop.f32.mrb[56].mxu1  ;;  %v2422_v14 = vpop.f32.mrb[75].mxu0 }
 0x1ac   :  { %v1542_v63 = vsel %vm1428_vm15, %v1279_v36, %v1485_v55  ;;  %v1020_v47 = vadd.f32 %v2976_v62, %v1019_v56  ;;  %v1021_v0 = vpop.f32.mrb[57].mxu1 }
 0x1ad   :  { %v2198_v58 = vpack.c.bf16 %v1542_v63, %v1541_v43  ;;  %v1022_v50 = vpop.f32.mrb[58].mxu1 }
 0x1ae   :  { %v1284_v4 = vadd.f32 %v3060_v3, %v1020_v47  ;;  %v1023_v49 = vadd.f32 %v2976_v62, %v1022_v50  ;;  %v1024_v7 = vpop.f32.mrb[59].mxu1 }
 0x1af   :  { %2282 = vst [vmem:[#allocation7 + $0x68] sm:$0xff] %v2198_v58  }
 0x1b0   :  { %v1486_v8 = vmul.f32 0.01, %v1284_v4  ;;  %v1287_v53 = vadd.f32 %v3062_v5, %v1023_v49  ;;  %vm1429_vm0 = vcmp.ge.f32.partialorder %v1284_v4, 0.0  ;;  %v3100_v27 = vpop.f32.mrb[76].mxu0 }
 0x1b1   :  { %v2425_v13 = vpop.f32.mrb[77].mxu0 }
 0x1b2   :  { %vm1430_vm1 = vcmp.ge.f32.partialorder %v1287_v53, 0.0  ;;  %v1487_v11 = vmul.f32 0.01, %v1287_v53  ;;  %v1543_v60 = vsel %vm1429_vm0, %v1284_v4, %v1486_v8  ;;  %v3102_v29 = vpop.f32.mrb[78].mxu0 }
 0x1b3   :  { %v1027_v61 = vpop.f32.mrb[60].mxu1  ;;  %v2426_v31 = vpop.f32.mrb[79].mxu0 }
 0x1b4   :  { %v1544_v17 = vsel %vm1430_vm1, %v1287_v53, %v1487_v11  ;;  %v1028_v3 = vadd.f32 %v2976_v62, %v1027_v61  ;;  %v1029_v19 = vpop.f32.mrb[61].mxu1 }
 0x1b5   :  { %v2203_v2 = vpack.c.bf16 %v1544_v17, %v1543_v60  ;;  %v1030_v6 = vpop.f32.mrb[62].mxu1 }
 0x1b6   :  { %v1292_v21 = vadd.f32 %v3068_v20, %v1028_v3  ;;  %v1031_v5 = vadd.f32 %v2976_v62, %v1030_v6  ;;  %v1032_v24 = vpop.f32.mrb[63].mxu1 }
 0x1b7   :  { %2283 = vst [vmem:[#allocation7 + $0x70] sm:$0xff] %v2203_v2  }
 0x1b8   :  { %v1488_v25 = vmul.f32 0.01, %v1292_v21  ;;  %v1295_v9 = vadd.f32 %v3070_v22, %v1031_v5  ;;  %vm1431_vm2 = vcmp.ge.f32.partialorder %v1292_v21, 0.0  ;;  %v3108_v44 = vpop.f32.mrb[80].mxu0 }
 0x1b9   :  { %v2429_v30 = vpop.f32.mrb[81].mxu0 }
 0x1ba   :  { %vm1432_vm3 = vcmp.ge.f32.partialorder %v1295_v9, 0.0  ;;  %v1489_v28 = vmul.f32 0.01, %v1295_v9  ;;  %v1545_v16 = vsel %vm1431_vm2, %v1292_v21, %v1488_v25  ;;  %v3110_v46 = vpop.f32.mrb[82].mxu0 }
 0x1bb   :  { %v1035_v15 = vpop.f32.mrb[64].mxu1  ;;  %v2430_v48 = vpop.f32.mrb[83].mxu0 }
 0x1bc   :  { %v1546_v34 = vsel %vm1432_vm3, %v1295_v9, %v1489_v28  ;;  %v1036_v20 = vadd.f32 %v2976_v62, %v1035_v15  ;;  %v1037_v35 = vpop.f32.mrb[65].mxu1 }
 0x1bd   :  { %v2208_v18 = vpack.c.bf16 %v1546_v34, %v1545_v16  ;;  %v1038_v23 = vpop.f32.mrb[66].mxu1 }
 0x1be   :  { %v1300_v38 = vadd.f32 %v3076_v37, %v1036_v20  ;;  %v1039_v22 = vadd.f32 %v2976_v62, %v1038_v23  ;;  %v1040_v41 = vpop.f32.mrb[67].mxu1 }
 0x1bf   :  { %2284 = vst [vmem:[#allocation7 + $0x78] sm:$0xff] %v2208_v18  }
 0x1c0   :  { %v1490_v42 = vmul.f32 0.01, %v1300_v38  ;;  %v1303_v26 = vadd.f32 %v3078_v39, %v1039_v22  ;;  %vm1433_vm4 = vcmp.ge.f32.partialorder %v1300_v38, 0.0  ;;  %v3116_v63 = vpop.f32.mrb[84].mxu0 }
 0x1c1   :  { %v2433_v47 = vpop.f32.mrb[85].mxu0 }
 0x1c2   :  { %vm1434_vm5 = vcmp.ge.f32.partialorder %v1303_v26, 0.0  ;;  %v1491_v45 = vmul.f32 0.01, %v1303_v26  ;;  %v1547_v32 = vsel %vm1433_vm4, %v1300_v38, %v1490_v42  ;;  %v3118_v58 = vpop.f32.mrb[86].mxu0 }
 0x1c3   :  { %v1043_v33 = vpop.f32.mrb[68].mxu1  ;;  %v2434_v4 = vpop.f32.mrb[87].mxu0 }
 0x1c4   :  { %v1548_v51 = vsel %vm1434_vm5, %v1303_v26, %v1491_v45  ;;  %v1044_v37 = vadd.f32 %v2976_v62, %v1043_v33  ;;  %v1045_v52 = vpop.f32.mrb[69].mxu1 }
 0x1c5   :  { %v2213_v36 = vpack.c.bf16 %v1548_v51, %v1547_v32  ;;  %v1046_v40 = vpop.f32.mrb[70].mxu1 }
 0x1c6   :  { %v1308_v55 = vadd.f32 %v3084_v54, %v1044_v37  ;;  %v1047_v39 = vadd.f32 %v2976_v62, %v1046_v40  ;;  %v1048_v56 = vpop.f32.mrb[71].mxu1 }
 0x1c7   :  { %2285 = vst [vmem:[#allocation7 + $0x80] sm:$0xff] %v2213_v36  }
 0x1c8   :  { %v1492_v1 = vmul.f32 0.01, %v1308_v55  ;;  %v1311_v43 = vadd.f32 %v3086_v57, %v1047_v39  ;;  %vm1435_vm6 = vcmp.ge.f32.partialorder %v1308_v55, 0.0  ;;  %v3124_v17 = vpop.f32.mrb[88].mxu0 }
 0x1c9   :  { %v2437_v3 = vpop.f32.mrb[89].mxu0 }
 0x1ca   :  { %vm1436_vm7 = vcmp.ge.f32.partialorder %v1311_v43, 0.0  ;;  %v1493_v0 = vmul.f32 0.01, %v1311_v43  ;;  %v1549_v49 = vsel %vm1435_vm6, %v1308_v55, %v1492_v1  ;;  %v3126_v2 = vpop.f32.mrb[90].mxu0 }
 0x1cb   :  { %v1051_v50 = vpop.f32.mrb[72].mxu1  ;;  %v2438_v21 = vpop.f32.mrb[91].mxu0 }
 0x1cc   :  { %v1550_v7 = vsel %vm1436_vm7, %v1311_v43, %v1493_v0  ;;  %v1052_v54 = vadd.f32 %v2976_v62, %v1051_v50  ;;  %v1053_v8 = vpop.f32.mrb[73].mxu1 }
 0x1cd   :  { %v2218_v53 = vpack.c.bf16 %v1550_v7, %v1549_v49  ;;  %v1054_v59 = vpop.f32.mrb[74].mxu1 }
 0x1ce   :  { %v1316_v11 = vadd.f32 %v3092_v10, %v1052_v54  ;;  %v1055_v57 = vadd.f32 %v2976_v62, %v1054_v59  ;;  %v1056_v61 = vpop.f32.mrb[75].mxu1 }
 0x1cf   :  { %2286 = vst [vmem:[#allocation7 + $0x88] sm:$0xff] %v2218_v53  }
 0x1d0   :  { %v1494_v14 = vmul.f32 0.01, %v1316_v11  ;;  %v1319_v60 = vadd.f32 %v3094_v12, %v1055_v57  ;;  %vm1437_vm8 = vcmp.ge.f32.partialorder %v1316_v11, 0.0  ;;  %v3132_v34 = vpop.f32.mrb[92].mxu0 }
 0x1d1   :  { %v2441_v20 = vpop.f32.mrb[93].mxu0 }
 0x1d2   :  { %vm1438_vm9 = vcmp.ge.f32.partialorder %v1319_v60, 0.0  ;;  %v1495_v19 = vmul.f32 0.01, %v1319_v60  ;;  %v1551_v5 = vsel %vm1437_vm8, %v1316_v11, %v1494_v14  ;;  %v3134_v18 = vpop.f32.mrb[94].mxu0 }
 0x1d3   :  { %v1059_v6 = vpop.f32.mrb[76].mxu1  ;;  %v2442_v38 = vpop.f32.mrb[95].mxu0 }
 0x1d4   :  { %v1552_v24 = vsel %vm1438_vm9, %v1319_v60, %v1495_v19  ;;  %v1060_v10 = vadd.f32 %v2976_v62, %v1059_v6  ;;  %v1061_v25 = vpop.f32.mrb[77].mxu1 }
 0x1d5   :  { %v2223_v9 = vpack.c.bf16 %v1552_v24, %v1551_v5  ;;  %v1062_v13 = vpop.f32.mrb[78].mxu1 }
 0x1d6   :  { %v1324_v28 = vadd.f32 %v3100_v27, %v1060_v10  ;;  %v1063_v12 = vadd.f32 %v2976_v62, %v1062_v13  ;;  %v1064_v15 = vpop.f32.mrb[79].mxu1 }
 0x1d7   :  { %2287 = vst [vmem:[#allocation7 + $0x90] sm:$0xff] %v2223_v9  }
 0x1d8   :  { %v1496_v31 = vmul.f32 0.01, %v1324_v28  ;;  %v1327_v16 = vadd.f32 %v3102_v29, %v1063_v12  ;;  %vm1439_vm10 = vcmp.ge.f32.partialorder %v1324_v28, 0.0  ;;  %v3140_v51 = vpop.f32.mrb[96].mxu0 }
 0x1d9   :  { %v2445_v37 = vpop.f32.mrb[97].mxu0 }
 0x1da   :  { %vm1440_vm11 = vcmp.ge.f32.partialorder %v1327_v16, 0.0  ;;  %v1497_v35 = vmul.f32 0.01, %v1327_v16  ;;  %v1553_v22 = vsel %vm1439_vm10, %v1324_v28, %v1496_v31  ;;  %v3142_v36 = vpop.f32.mrb[98].mxu0 }
 0x1db   :  { %v1067_v23 = vpop.f32.mrb[80].mxu1  ;;  %v2446_v55 = vpop.f32.mrb[99].mxu0 }
 0x1dc   :  { %v1554_v41 = vsel %vm1440_vm11, %v1327_v16, %v1497_v35  ;;  %v1068_v27 = vadd.f32 %v2976_v62, %v1067_v23  ;;  %v1069_v42 = vpop.f32.mrb[81].mxu1 }
 0x1dd   :  { %v2228_v26 = vpack.c.bf16 %v1554_v41, %v1553_v22  ;;  %v1070_v30 = vpop.f32.mrb[82].mxu1 }
 0x1de   :  { %v1332_v45 = vadd.f32 %v3108_v44, %v1068_v27  ;;  %v1071_v29 = vadd.f32 %v2976_v62, %v1070_v30  ;;  %v1072_v33 = vpop.f32.mrb[83].mxu1 }
 0x1df   :  { %2288 = vst [vmem:[#allocation7 + $0x98] sm:$0xff] %v2228_v26  }
 0x1e0   :  { %v1498_v48 = vmul.f32 0.01, %v1332_v45  ;;  %v1335_v32 = vadd.f32 %v3110_v46, %v1071_v29  ;;  %vm1441_vm12 = vcmp.ge.f32.partialorder %v1332_v45, 0.0  ;;  %v3148_v7 = vpop.f32.mrb[100].mxu0 }
 0x1e1   :  { %v2449_v54 = vpop.f32.mrb[101].mxu0 }
 0x1e2   :  { %vm1442_vm13 = vcmp.ge.f32.partialorder %v1335_v32, 0.0  ;;  %v1499_v52 = vmul.f32 0.01, %v1335_v32  ;;  %v1555_v39 = vsel %vm1441_vm12, %v1332_v45, %v1498_v48  ;;  %v3150_v53 = vpop.f32.mrb[102].mxu0 }
 0x1e3   :  { %v1075_v40 = vpop.f32.mrb[84].mxu1  ;;  %v2450_v11 = vpop.f32.mrb[103].mxu0 }
 0x1e4   :  { %v1556_v56 = vsel %vm1442_vm13, %v1335_v32, %v1499_v52  ;;  %v1076_v44 = vadd.f32 %v2976_v62, %v1075_v40  ;;  %v1077_v1 = vpop.f32.mrb[85].mxu1 }
 0x1e5   :  { %v2233_v43 = vpack.c.bf16 %v1556_v56, %v1555_v39  ;;  %v1078_v47 = vpop.f32.mrb[86].mxu1 }
 0x1e6   :  { %v1340_v0 = vadd.f32 %v3116_v63, %v1076_v44  ;;  %v1079_v46 = vadd.f32 %v2976_v62, %v1078_v47  ;;  %v1080_v50 = vpop.f32.mrb[87].mxu1 }
 0x1e7   :  { %2289 = vst [vmem:[#allocation7 + $0xa0] sm:$0xff] %v2233_v43  }
 0x1e8   :  { %v1500_v4 = vmul.f32 0.01, %v1340_v0  ;;  %v1343_v49 = vadd.f32 %v3118_v58, %v1079_v46  ;;  %vm1443_vm14 = vcmp.ge.f32.partialorder %v1340_v0, 0.0  ;;  %v3156_v24 = vpop.f32.mrb[104].mxu0 }
 0x1e9   :  { %v2453_v10 = vpop.f32.mrb[105].mxu0 }
 0x1ea   :  { %vm1444_vm15 = vcmp.ge.f32.partialorder %v1343_v49, 0.0  ;;  %v1501_v8 = vmul.f32 0.01, %v1343_v49  ;;  %v1557_v57 = vsel %vm1443_vm14, %v1340_v0, %v1500_v4  ;;  %v3158_v9 = vpop.f32.mrb[106].mxu0 }
 0x1eb   :  { %v1083_v59 = vpop.f32.mrb[88].mxu1  ;;  %v2454_v28 = vpop.f32.mrb[107].mxu0 }
 0x1ec   :  { %v1558_v61 = vsel %vm1444_vm15, %v1343_v49, %v1501_v8  ;;  %v1084_v63 = vadd.f32 %v2976_v62, %v1083_v59  ;;  %v1085_v14 = vpop.f32.mrb[89].mxu1 }
 0x1ed   :  { %v2238_v60 = vpack.c.bf16 %v1558_v61, %v1557_v57  ;;  %v1086_v3 = vpop.f32.mrb[90].mxu1 }
 0x1ee   :  { %v1348_v19 = vadd.f32 %v3124_v17, %v1084_v63  ;;  %v1087_v58 = vadd.f32 %v2976_v62, %v1086_v3  ;;  %v1088_v6 = vpop.f32.mrb[91].mxu1 }
 0x1ef   :  { %2290 = vst [vmem:[#allocation7 + $0xa8] sm:$0xff] %v2238_v60  }
 0x1f0   :  { %v1502_v21 = vmul.f32 0.01, %v1348_v19  ;;  %v1351_v5 = vadd.f32 %v3126_v2, %v1087_v58  ;;  %vm1445_vm0 = vcmp.ge.f32.partialorder %v1348_v19, 0.0  ;;  %v3164_v41 = vpop.f32.mrb[108].mxu0 }
 0x1f1   :  { %v2457_v27 = vpop.f32.mrb[109].mxu0 }
 0x1f2   :  { %vm1446_vm1 = vcmp.ge.f32.partialorder %v1351_v5, 0.0  ;;  %v1503_v25 = vmul.f32 0.01, %v1351_v5  ;;  %v1559_v12 = vsel %vm1445_vm0, %v1348_v19, %v1502_v21  ;;  %v3166_v26 = vpop.f32.mrb[110].mxu0 }
 0x1f3   :  { %v1091_v13 = vpop.f32.mrb[92].mxu1  ;;  %v2458_v45 = vpop.f32.mrb[111].mxu0 }
 0x1f4   :  { %v1560_v15 = vsel %vm1446_vm1, %v1351_v5, %v1503_v25  ;;  %v1092_v17 = vadd.f32 %v2976_v62, %v1091_v13  ;;  %v1093_v31 = vpop.f32.mrb[93].mxu1 }
 0x1f5   :  { %v2243_v16 = vpack.c.bf16 %v1560_v15, %v1559_v12  ;;  %v1094_v20 = vpop.f32.mrb[94].mxu1 }
 0x1f6   :  { %v1356_v35 = vadd.f32 %v3132_v34, %v1092_v17  ;;  %v1095_v2 = vadd.f32 %v2976_v62, %v1094_v20  ;;  %v1096_v23 = vpop.f32.mrb[95].mxu1 }
 0x1f7   :  { %2291 = vst [vmem:[#allocation7 + $0xb0] sm:$0xff] %v2243_v16  }
 0x1f8   :  { %v1504_v38 = vmul.f32 0.01, %v1356_v35  ;;  %v1359_v22 = vadd.f32 %v3134_v18, %v1095_v2  ;;  %vm1447_vm2 = vcmp.ge.f32.partialorder %v1356_v35, 0.0  ;;  %v3172_v56 = vpop.f32.mrb[112].mxu0 }
 0x1f9   :  { %v2461_v44 = vpop.f32.mrb[113].mxu0 }
 0x1fa   :  { %vm1448_vm3 = vcmp.ge.f32.partialorder %v1359_v22, 0.0  ;;  %v1505_v42 = vmul.f32 0.01, %v1359_v22  ;;  %v1561_v29 = vsel %vm1447_vm2, %v1356_v35, %v1504_v38  ;;  %v1398_v43 = vpop.f32.mrb[114].mxu0 }
 0x1fb   :  { %v1099_v30 = vpop.f32.mrb[96].mxu1  ;;  %v2462_v0 = vpop.f32.mrb[115].mxu0 }
 0x1fc   :  { %v1562_v33 = vsel %vm1448_vm3, %v1359_v22, %v1505_v42  ;;  %v1100_v34 = vadd.f32 %v2976_v62, %v1099_v30  ;;  %v1101_v48 = vpop.f32.mrb[97].mxu1 }
 0x1fd   :  { %v2248_v32 = vpack.c.bf16 %v1562_v33, %v1561_v29  ;;  %v1102_v37 = vpop.f32.mrb[98].mxu1 }
 0x1fe   :  { %v1364_v52 = vadd.f32 %v3140_v51, %v1100_v34  ;;  %v1103_v18 = vadd.f32 %v2976_v62, %v1102_v37  ;;  %v1104_v40 = vpop.f32.mrb[99].mxu1 }
 0x1ff   :  { %2292 = vst [vmem:[#allocation7 + $0xb8] sm:$0xff] %v2248_v32  }
 0x200   :  { %v1506_v55 = vmul.f32 0.01, %v1364_v52  ;;  %v1367_v39 = vadd.f32 %v3142_v36, %v1103_v18  ;;  %vm1449_vm4 = vcmp.ge.f32.partialorder %v1364_v52, 0.0  ;;  %v2726_v36 = vld [vmem:[%s3202_s2] ss:$0 sm:$0xff]  ;;  %s2809_s2 = smov [#allocation7]  }
 0x201   :  { %s1863_s15 = sshll.u32 %s2809_s2, 4  ;;  %s1864_s15 = int_to_ptr.vmem [resolvable:$true] %s1863_s15 }
 0x202   :  { %vm1450_vm5 = vcmp.ge.f32.partialorder %v1367_v39, 0.0  ;;  %v1507_v1 = vmul.f32 0.01, %v1367_v39  ;;  %v1563_v46 = vsel %vm1449_vm4, %v1364_v52, %v1506_v55  ;;  %s2771_s16 = scalar_lea.vmem %s1864_s15, 3648  ;;  %p2776_p3 = scmp.lt.s32.totalorder %s1864_s15, %s1864_s15 }
 0x203   :  { %v1107_v47 = vpop.f32.mrb[100].mxu1  ;;  %p2772_p2 = scmp.ne.s32.totalorder %s1864_s15, %s2771_s16  ;;  %p2777_p4 = scmp.lt.s32.totalorder %s2771_s16, %s2771_s16 }
 0x204   :  { %v1564_v50 = vsel %vm1450_vm5, %v1367_v39, %v1507_v1  ;;  %v1108_v51 = vadd.f32 %v2976_v62, %v1107_v47  ;;  %v1109_v4 = vpop.f32.mrb[101].mxu1 }
 0x205   :  { %v2253_v49 = vpack.c.bf16 %v1564_v50, %v1563_v46  ;;  %v1110_v54 = vpop.f32.mrb[102].mxu1  ;;  %p2778_p5 = por %p2777_p4, %p2776_p3 }
 0x206   :  { %v1372_v8 = vadd.f32 %v3148_v7, %v1108_v51  ;;  %v1111_v59 = vadd.f32 %v2726_v36, %v1110_v54  ;;  %v1112_v11 = vpop.f32.mrb[103].mxu1 }
 0x207   :  { %2293 = vst [vmem:[#allocation7 + $0xc0] sm:$0xff] %v2253_v49   ;;  %p2779_p6 = pnand %p2778_p5, %p2772_p2 }
 0x208   :  { %v1508_v57 = vmul.f32 0.01, %v1372_v8  ;;  %v1375_v61 = vadd.f32 %v3150_v53, %v1111_v59  ;;  %vm1451_vm6 = vcmp.ge.f32.partialorder %v1372_v8, 0.0 }
 0x20a   :  { %vm1452_vm7 = vcmp.ge.f32.partialorder %v1375_v61, 0.0  ;;  %v1509_v63 = vmul.f32 0.01, %v1375_v61  ;;  %v1565_v62 = vsel %vm1451_vm6, %v1372_v8, %v1508_v57 }
 0x20b   :  { %v1115_v14 = vpop.f32.mrb[104].mxu1 }
 0x20c   :  { %v1566_v60 = vsel %vm1452_vm7, %v1375_v61, %v1509_v63  ;;  %v1116_v3 = vadd.f32 %v2726_v36, %v1115_v14  ;;  %v1117_v19 = vpop.f32.mrb[105].mxu1 }
 0x20d   :  { %v2258_v58 = vpack.c.bf16 %v1566_v60, %v1565_v62  ;;  %v1118_v7 = vpop.f32.mrb[106].mxu1 }
 0x20e   :  { %v1380_v6 = vadd.f32 %v3156_v24, %v1116_v3  ;;  %v1119_v21 = vadd.f32 %v2726_v36, %v1118_v7  ;;  %v1120_v5 = vpop.f32.mrb[107].mxu1 }
 0x20f   :  { %2294 = vst [vmem:[#allocation7 + $0xc8] sm:$0xff] %v2258_v58  }
 0x210   :  { %v1510_v10 = vmul.f32 0.01, %v1380_v6  ;;  %v1383_v25 = vadd.f32 %v3158_v9, %v1119_v21  ;;  %vm1453_vm8 = vcmp.ge.f32.partialorder %v1380_v6, 0.0 }
 0x212   :  { %vm1454_vm9 = vcmp.ge.f32.partialorder %v1383_v25, 0.0  ;;  %v1511_v53 = vmul.f32 0.01, %v1383_v25  ;;  %v1567_v28 = vsel %vm1453_vm8, %v1380_v6, %v1510_v10 }
 0x213   :  { %v1123_v13 = vpop.f32.mrb[108].mxu1 }
 0x214   :  { %v1568_v12 = vsel %vm1454_vm9, %v1383_v25, %v1511_v53  ;;  %v1124_v15 = vadd.f32 %v2726_v36, %v1123_v13  ;;  %v1125_v17 = vpop.f32.mrb[109].mxu1 }
 0x215   :  { %v2263_v31 = vpack.c.bf16 %v1568_v12, %v1567_v28  ;;  %v1126_v16 = vpop.f32.mrb[110].mxu1 }
 0x216   :  { %v1388_v20 = vadd.f32 %v3164_v41, %v1124_v15  ;;  %v1127_v35 = vadd.f32 %v2726_v36, %v1126_v16  ;;  %v1128_v24 = vpop.f32.mrb[111].mxu1 }
 0x217   :  { %2295 = vst [vmem:[#allocation7 + $0xd0] sm:$0xff] %v2263_v31  }
 0x218   :  { %v1512_v2 = vmul.f32 0.01, %v1388_v20  ;;  %v1391_v23 = vadd.f32 %v3166_v26, %v1127_v35  ;;  %vm1455_vm10 = vcmp.ge.f32.partialorder %v1388_v20, 0.0 }
 0x21a   :  { %vm1456_vm11 = vcmp.ge.f32.partialorder %v1391_v23, 0.0  ;;  %v1513_v9 = vmul.f32 0.01, %v1391_v23  ;;  %v1569_v22 = vsel %vm1455_vm10, %v1388_v20, %v1512_v2 }
 0x21b   :  { %v1131_v38 = vpop.f32.mrb[112].mxu1 }
 0x21c   :  { %v1570_v27 = vsel %vm1456_vm11, %v1391_v23, %v1513_v9  ;;  %v1132_v42 = vadd.f32 %v2726_v36, %v1131_v38  ;;  %v1133_v30 = vpop.f32.mrb[113].mxu1 }
 0x21d   :  { %v2268_v45 = vpack.c.bf16 %v1570_v27, %v1569_v22  ;;  %v1134_v29 = vpop.f32.mrb[114].mxu1 }
 0x21e   :  { %v1396_v33 = vadd.f32 %v3172_v56, %v1132_v42  ;;  %v1135_v34 = vpop.f32.mrb[115].mxu1 }
 0x21f   :  { %2296 = vst [vmem:[#allocation7 + $0xd8] sm:$0xff] %v2268_v45  }
 0x220   :  { %vm1457_vm12 = vcmp.ge.f32.partialorder %v1396_v33, 0.0  ;;  %v1514_v41 = vmul.f32 0.01, %v1396_v33 }
 0x222   :  { %v1571_v48 = vsel %vm1457_vm12, %v1396_v33, %v1514_v41 }
 0x223   :  { %v2129_v26 = vpack.c.bf16 %v1571_v48, %v1571_v48 }
 0x225   :  { %1857 = vst [vmem:[#allocation7 + $0xe0] sm:$0xf] %v2129_v26 }
 0x226   :  { %2782 = shalt.err (!%p2779_p6)
}
 0x227   :  { %s2783_s19 = scalar_lea.hbm %s3203_s3, 3648 }
 0x228   :  { %p2784_p7 = scmp.ne.s32.totalorder %s3203_s3, %s2783_s19  ;;  %p2787_p8 = scmp.lt.u32.totalorder %s2783_s19, %s3203_s3 }
 0x22a   :  { %p2789_p9 = pnand %p2787_p8, %p2784_p7 }
 0x22c   :  { %2792 = shalt.err (!%p2789_p9)
}
 0x22d   :  { %1869 = dma.vmem_to_hbm [thread:$0]  %s1864_s15, 3648, %s3203_s3, [#allocation4], %s2803_s0, %s2803_s0, %s2804_s9  }
 0x22e   :  { %2797 = dma.done.wait [#allocation4], 3648  }
 0x22f   :  { %2798 = vsyncadd [#allocation4], 4294963648 }
 0x230   :  { %1873 = vsyncpa [#allocation3], 1 }
 0x231   :  { %1874 = vsyncpa [#allocation6], 1 }
 0x232   :  { %1875 = vsyncpa [#allocation4], 1 }

</bundles_post_ra>
